<compile_context>
chip_gen: v6e
topology: v6e:2x2x1
jax: 0.10.0
libtpu: 0.0.40
codegen_flags: <defaults>
</compile_context>

<pallas_src>
import jax
import jax.numpy as jnp
from jax.experimental import pallas as pl
from jax.experimental.pallas import tpu as pltpu

# ----------------------------------------------------------------------------
# Constructor hyper-parameters (small, self-consistent instantiation).
# input_size MUST be 2 because forward() selects jet columns [5, 9].
# ----------------------------------------------------------------------------
NTRK_IN = 4
INPUT_SIZE = 2
HIDDEN = 16            # output_size of each LSTM
NUM_LAYERS = 1         # single layer => internal LSTM dropout inactive
BIDIRECTIONAL = False
NUM_DIR = 2 if BIDIRECTIONAL else 1
BATCH = 2
TAGGER_OUT = 3
SEQ = 8                # padded sequence length
JET_FEAT = 12          # raw per-timestep jet features (>= 10 so cols 5,9 exist)

LSTM_D = 2 * HIDDEN * NUM_DIR          # 32: [h_lead | h_sublead]
D_HIDDEN = LSTM_D + 2                  # 34: concat([h_lead, h_sublead, ntrk_hidden])
D_ALL = 3 * D_HIDDEN                   # 102: concat([mean, var, hidden])


def double_lstm_kernel(
    xslab_ref, len2h_ref, ntrk_ref, bw_ref,
    w_ih_ref, w_hh_ref, b_gate_ref,
    w_n0_ref, b_n0_ref, w_n1_ref, b_n1_ref,
    w_m_lstm_ref, w_v_lstm_ref, w_h_lstm_ref,
    w_m_ntrk_ref, w_v_ntrk_ref, w_h_ntrk_ref,
    b_d_ref, w_d2_ref, b_d2_ref,
    out_ref,
):
    H2 = w_hh_ref.shape[0]        # 2H = 32 fused hidden width
    H = H2 // 2
    B = len2h_ref.shape[0]
    T = xslab_ref.shape[0] // B

    # --- hoisted input projection: ONE matmul for all timesteps & both LSTMs.
    # xslab rows are time-major (row = t*B + b), cols = [lead0, lead1, sub0, sub1].
    # Gate lane layout (8H = 128 = one vreg lane width):
    #   [i_l, i_s, f_l, f_s, o_l, o_s, g_l, g_s], each H wide.
    xproj = (jnp.dot(xslab_ref[...], w_ih_ref[...],
                     preferred_element_type=jnp.float32)
             + b_gate_ref[...])                                   # (T*B, 8H)
    xproj = xproj.reshape(T, B, 8 * H)                            # static t index

    len2h = len2h_ref[...]                                        # (B, 2H) int32
    w_hh = w_hh_ref[...]                                          # (2H, 8H)

    h = jnp.zeros((B, H2), jnp.float32)                           # [h_lead | h_sub]
    c = jnp.zeros((B, H2), jnp.float32)
    for t in range(T):                    # static unroll; one vmatmul per step
        gates = xproj[t] + jnp.dot(h, w_hh,
                                   preferred_element_type=jnp.float32)   # (B, 8H)
        sig = jax.nn.sigmoid(gates[:, 0:6 * H])   # i, f, o in one contiguous slice
        i_g = sig[:, 0:H2]
        f_g = sig[:, H2:2 * H2]
        o_g = sig[:, 2 * H2:3 * H2]
        g_g = jnp.tanh(gates[:, 6 * H:8 * H])
        c_new = f_g * c + i_g * g_g
        h_new = o_g * jnp.tanh(c_new)
        mask = t < len2h                  # (B, 2H); freezes state past seq length
        h = jnp.where(mask, h_new, h)
        c = jnp.where(mask, c_new, c)
    h_fused = h                           # (B, 2H) == [h_lead | h_sublead]

    # ntrk MLP: relu(W1 . dropout(relu(W0 . ((x - 50)/100) + b0)) + b1)
    # (dropout layers are eval-mode identities)
    ntrk = (ntrk_ref[...] - 50.0) / 100.0
    h_n = jnp.maximum(
        jnp.dot(ntrk, w_n0_ref[...], preferred_element_type=jnp.float32)
        + b_n0_ref[...], 0.0)
    ntrk_hidden = jnp.maximum(
        jnp.dot(h_n, w_n1_ref[...], preferred_element_type=jnp.float32)
        + b_n1_ref[...], 0.0)                                     # (B, 2)

    # Weighted batch statistics: VPU multiply + sublane reduce (no 1-row matmuls,
    # no lane-unaligned concats; "std" is really a weighted variance, as in torch).
    bw = bw_ref[...]                                              # (B, 1)
    mean_l = jnp.sum(bw * h_fused, axis=0, keepdims=True)         # (1, 2H)
    sec_l = jnp.sum(bw * h_fused * h_fused, axis=0, keepdims=True)
    var_l = sec_l - mean_l * mean_l
    mean_n = jnp.sum(bw * ntrk_hidden, axis=0, keepdims=True)     # (1, 2)
    sec_n = jnp.sum(bw * ntrk_hidden * ntrk_hidden, axis=0, keepdims=True)
    var_n = sec_n - mean_n * mean_n

    # Dense layer with w_dense pre-split along K in the wrapper: mean/var
    # contributions collapse to a single (1, 128) row broadcast onto the
    # per-row hidden contribution (all matmuls stay lane-aligned, no concats).
    stats = (jnp.dot(mean_l, w_m_lstm_ref[...], preferred_element_type=jnp.float32)
             + jnp.dot(var_l, w_v_lstm_ref[...], preferred_element_type=jnp.float32)
             + jnp.dot(mean_n, w_m_ntrk_ref[...], preferred_element_type=jnp.float32)
             + jnp.dot(var_n, w_v_ntrk_ref[...], preferred_element_type=jnp.float32))  # (1, 128)
    hid_part = (jnp.dot(h_fused, w_h_lstm_ref[...], preferred_element_type=jnp.float32)
                + jnp.dot(ntrk_hidden, w_h_ntrk_ref[...],
                          preferred_element_type=jnp.float32))                          # (B, 128)

    h_d = jnp.maximum(hid_part + stats + b_d_ref[...], 0.0)       # (B, 128)
    out = (jnp.dot(h_d, w_d2_ref[...], preferred_element_type=jnp.float32)
           + b_d2_ref[...])                                       # (B, TAGGER_OUT)
    out_ref[...] = out.astype(out_ref.dtype)


# ----------------------------------------------------------------------------
# Parameter init (PyTorch layouts) and wrapper-side weight fusion.
# ----------------------------------------------------------------------------
def init_params(key):
    ks = jax.random.split(key, 16)

    def rnd(k, shape, scale=0.1):
        return (scale * jax.random.normal(k, shape)).astype(jnp.float32)

    H = HIDDEN
    return {
        # lstm_lead (PyTorch layout: rows [i, f, g, o])
        "w_ih_lead": rnd(ks[0], (4 * H, INPUT_SIZE)),
        "w_hh_lead": rnd(ks[1], (4 * H, H)),
        "b_ih_lead": rnd(ks[2], (4 * H,)),
        "b_hh_lead": rnd(ks[3], (4 * H,)),
        # lstm_sublead
        "w_ih_sub": rnd(ks[4], (4 * H, INPUT_SIZE)),
        "w_hh_sub": rnd(ks[5], (4 * H, H)),
        "b_ih_sub": rnd(ks[6], (4 * H,)),
        "b_hh_sub": rnd(ks[7], (4 * H,)),
        # dense_ntrk0 / dense_ntrk1
        "w_ntrk0": rnd(ks[8], (32, NTRK_IN)),
        "b_ntrk0": rnd(ks[9], (32,)),
        "w_ntrk1": rnd(ks[10], (2, 32)),
        "b_ntrk1": rnd(ks[11], (2,)),
        # dense / dense2
        "w_dense": rnd(ks[12], (128, D_ALL)),
        "b_dense": rnd(ks[13], (128,)),
        "w_dense2": rnd(ks[14], (TAGGER_OUT, 128)),
        "b_dense2": rnd(ks[15], (TAGGER_OUT,)),
    }


def _permute_gates(w, H):
    # PyTorch gate order along rows is [i, f, g, o]; reorder to [i, f, o, g]
    # so sigmoid / tanh each act on one contiguous slice in the kernel.
    return jnp.concatenate([w[0:H], w[H:2 * H], w[3 * H:4 * H], w[2 * H:3 * H]],
                           axis=0)


def _fuse_lstm_weights(params):
    """Build fused (block-diagonal, gate-interleaved) LSTM weights.

    Gate lane layout of the fused 8H-wide gate vector:
      [i_lead, i_sub, f_lead, f_sub, o_lead, o_sub, g_lead, g_sub], each H wide.
    """
    H = HIDDEN

    def block_diag(w_lead, w_sub, rows):
        wl = _permute_gates(w_lead, H).T.reshape(rows, 4, 1, H)
        ws = _permute_gates(w_sub, H).T.reshape(rows, 4, 1, H)
        z = jnp.zeros_like(wl)
        top = jnp.concatenate([wl, z], axis=2)     # lead rows -> lead gate lanes
        bot = jnp.concatenate([z, ws], axis=2)     # sub rows  -> sub gate lanes
        return jnp.concatenate([top, bot], axis=0).reshape(2 * rows, 8 * H)

    w_ih_f = block_diag(params["w_ih_lead"], params["w_ih_sub"], INPUT_SIZE)  # (4, 128)
    w_hh_f = block_diag(params["w_hh_lead"], params["w_hh_sub"], H)           # (32, 128)

    bl = _permute_gates(params["b_ih_lead"] + params["b_hh_lead"], H).reshape(4, 1, H)
    bs = _permute_gates(params["b_ih_sub"] + params["b_hh_sub"], H).reshape(4, 1, H)
    b_f = jnp.concatenate([bl, bs], axis=1).reshape(1, 8 * H)                 # (1, 128)
    return w_ih_f, w_hh_f, b_f


def double_lstm_forward(ntrk_inputs, leading_jets, subleading_jets, lengths,
                        batch_weights, params):
    B, T = leading_jets.shape[0], leading_jets.shape[1]
    H = HIDDEN

    # --- plain-JAX glue: feature-column select [5, 9], lane-dense 2-D slab ---
    cols = jnp.array([5, 9], dtype=jnp.int32)
    lead = leading_jets[:, :, cols].astype(jnp.float32)      # (B, T, 2)
    sub = subleading_jets[:, :, cols].astype(jnp.float32)    # (B, T, 2)
    # time-major rows (row = t*B + b), cols [lead0, lead1, sub0, sub1]
    xslab = jnp.concatenate([lead, sub], axis=2).transpose(1, 0, 2).reshape(T * B, 4)
    # (the sort / pack / unsort in the PyTorch code is a no-op w.r.t. the final
    #  hidden states; the kernel uses per-sequence length masking instead)

    lengths = lengths.astype(jnp.int32)
    len2h = jnp.concatenate(
        [jnp.broadcast_to(lengths[:, 0:1], (B, H)),
         jnp.broadcast_to(lengths[:, 1:2], (B, H))], axis=1)   # (B, 2H) int32

    bw_col = batch_weights.astype(jnp.float32).reshape(B, 1)

    w_ih_f, w_hh_f, b_gate = _fuse_lstm_weights(params)

    # Split dense weight along K: columns of all_features are
    # [mean(34) | var(34) | hidden(34)], hidden = [h_lead(16) | h_sub(16) | ntrk(2)].
    wd = params["w_dense"].T                                   # (102, 128)
    w_m, w_v, w_h = wd[0:D_HIDDEN], wd[D_HIDDEN:2 * D_HIDDEN], wd[2 * D_HIDDEN:3 * D_HIDDEN]
    w_m_lstm, w_m_ntrk = w_m[:LSTM_D], w_m[LSTM_D:]
    w_v_lstm, w_v_ntrk = w_v[:LSTM_D], w_v[LSTM_D:]
    w_h_lstm, w_h_ntrk = w_h[:LSTM_D], w_h[LSTM_D:]

    args = (
        xslab, len2h, ntrk_inputs.astype(jnp.float32), bw_col,
        w_ih_f, w_hh_f, b_gate,
        params["w_ntrk0"].T, params["b_ntrk0"].reshape(1, -1),
        params["w_ntrk1"].T, params["b_ntrk1"].reshape(1, -1),
        w_m_lstm, w_v_lstm, w_h_lstm,
        w_m_ntrk, w_v_ntrk, w_h_ntrk,
        params["b_dense"].reshape(1, -1),
        params["w_dense2"].T, params["b_dense2"].reshape(1, -1),
    )
    in_specs = [pl.BlockSpec(memory_space=pltpu.MemorySpace.VMEM)
                for _ in range(len(args))]
    return pl.pallas_call(
        double_lstm_kernel,
        out_shape=jax.ShapeDtypeStruct((B, TAGGER_OUT), jnp.float32),
        in_specs=in_specs,
        out_specs=pl.BlockSpec(memory_space=pltpu.MemorySpace.VMEM),
    )(*args)


if __name__ == "__main__":
    key = jax.random.PRNGKey(0)
    k1, k2, k3, k4, k5 = jax.random.split(key, 5)

    leading_jets = jax.random.normal(k1, (BATCH, SEQ, JET_FEAT), jnp.float32)
    subleading_jets = jax.random.normal(k2, (BATCH, SEQ, JET_FEAT), jnp.float32)
    lengths = jax.random.randint(k3, (BATCH, 2), 1, SEQ + 1).astype(jnp.int32)
    ntrk_inputs = jax.random.uniform(k4, (BATCH, NTRK_IN), jnp.float32, 0.0, 100.0)
    batch_weights = jnp.full((1, BATCH), 1.0 / BATCH, jnp.float32)

    params = init_params(k5)

    out = double_lstm_forward(ntrk_inputs, leading_jets, subleading_jets,
                              lengths, batch_weights, params)
    jax.block_until_ready(out)
    assert out.shape == (BATCH, TAGGER_OUT)
    assert bool(jnp.all(jnp.isfinite(out)))
    print("KERNEL_OK")
</pallas_src>

<mosaic_0001>
module attributes {stable_mosaic.version = 11 : i64} {
  func.func @double_lstm_kernel(%arg0: memref<16x4xf32, #tpu.memory_space<vmem>>, %arg1: memref<2x32xi32, #tpu.memory_space<vmem>>, %arg2: memref<2x4xf32, #tpu.memory_space<vmem>>, %arg3: memref<2x1xf32, #tpu.memory_space<vmem>>, %arg4: memref<4x128xf32, #tpu.memory_space<vmem>>, %arg5: memref<32x128xf32, #tpu.memory_space<vmem>>, %arg6: memref<1x128xf32, #tpu.memory_space<vmem>>, %arg7: memref<4x32xf32, #tpu.memory_space<vmem>>, %arg8: memref<1x32xf32, #tpu.memory_space<vmem>>, %arg9: memref<32x2xf32, #tpu.memory_space<vmem>>, %arg10: memref<1x2xf32, #tpu.memory_space<vmem>>, %arg11: memref<32x128xf32, #tpu.memory_space<vmem>>, %arg12: memref<32x128xf32, #tpu.memory_space<vmem>>, %arg13: memref<32x128xf32, #tpu.memory_space<vmem>>, %arg14: memref<2x128xf32, #tpu.memory_space<vmem>>, %arg15: memref<2x128xf32, #tpu.memory_space<vmem>>, %arg16: memref<2x128xf32, #tpu.memory_space<vmem>>, %arg17: memref<1x128xf32, #tpu.memory_space<vmem>>, %arg18: memref<128x3xf32, #tpu.memory_space<vmem>>, %arg19: memref<1x3xf32, #tpu.memory_space<vmem>>, %arg20: memref<2x3xf32, #tpu.memory_space<vmem>>) attributes {dimension_semantics = [], scalar_prefetch = 0 : i64, scratch_operands = 0 : i64, tpu.core_type = #tpu.core_type<tc>} {
    %c0 = arith.constant 0 : index
    %c0_0 = arith.constant 0 : index
    %0 = vector.load %arg0[%c0, %c0_0] : memref<16x4xf32, #tpu.memory_space<vmem>>, vector<16x4xf32>
    %c0_1 = arith.constant 0 : index
    %c0_2 = arith.constant 0 : index
    %1 = vector.load %arg4[%c0_1, %c0_2] : memref<4x128xf32, #tpu.memory_space<vmem>>, vector<4x128xf32>
    %cst = arith.constant dense<0.000000e+00> : vector<16x128xf32>
    %2 = tpu.matmul %0, %1, %cst {dimension_numbers = #tpu.dot_dimension_numbers<[1], [0], [0], [1], [0, 0, 1, 1], [], []>} : vector<16x4xf32>, vector<4x128xf32>, vector<16x128xf32> -> vector<16x128xf32>
    %c0_3 = arith.constant 0 : index
    %c0_4 = arith.constant 0 : index
    %3 = vector.load %arg6[%c0_3, %c0_4] : memref<1x128xf32, #tpu.memory_space<vmem>>, vector<1x128xf32>
    %4 = vector.broadcast %3 : vector<1x128xf32> to vector<16x128xf32>
    %5 = arith.addf %2, %4 : vector<16x128xf32>
    %6 = vector.shape_cast %5 : vector<16x128xf32> to vector<8x2x128xf32>
    %c0_5 = arith.constant 0 : index
    %c0_6 = arith.constant 0 : index
    %7 = vector.load %arg1[%c0_5, %c0_6] : memref<2x32xi32, #tpu.memory_space<vmem>>, vector<2x32xi32>
    %c0_7 = arith.constant 0 : index
    %c0_8 = arith.constant 0 : index
    %8 = vector.load %arg5[%c0_7, %c0_8] : memref<32x128xf32, #tpu.memory_space<vmem>>, vector<32x128xf32>
    %cst_9 = arith.constant 0.000000e+00 : f32
    %9 = vector.broadcast %cst_9 : f32 to vector<2x32xf32>
    %cst_10 = arith.constant 0.000000e+00 : f32
    %10 = vector.broadcast %cst_10 : f32 to vector<2x32xf32>
    %11 = vector.extract_strided_slice %6 {offsets = [0, 0, 0], sizes = [1, 2, 128], strides = [1, 1, 1]} : vector<8x2x128xf32> to vector<1x2x128xf32>
    %12 = vector.shape_cast %11 : vector<1x2x128xf32> to vector<2x128xf32>
    %cst_11 = arith.constant dense<0.000000e+00> : vector<2x128xf32>
    %13 = tpu.matmul %9, %8, %cst_11 {dimension_numbers = #tpu.dot_dimension_numbers<[1], [0], [0], [1], [0, 0, 1, 1], [], []>} : vector<2x32xf32>, vector<32x128xf32>, vector<2x128xf32> -> vector<2x128xf32>
    %14 = arith.addf %12, %13 : vector<2x128xf32>
    %15 = vector.extract_strided_slice %14 {offsets = [0, 0], sizes = [2, 96], strides = [1, 1]} : vector<2x128xf32> to vector<2x96xf32>
    %16 = arith.negf %15 : vector<2x96xf32>
    %17 = math.exp %16 : vector<2x96xf32>
    %cst_12 = arith.constant 1.000000e+00 : f32
    %18 = vector.broadcast %cst_12 : f32 to vector<2x96xf32>
    %19 = arith.addf %18, %17 : vector<2x96xf32>
    %20 = arith.divf %18, %19 : vector<2x96xf32>
    %21 = vector.extract_strided_slice %20 {offsets = [0, 0], sizes = [2, 32], strides = [1, 1]} : vector<2x96xf32> to vector<2x32xf32>
    %22 = vector.extract_strided_slice %20 {offsets = [0, 32], sizes = [2, 32], strides = [1, 1]} : vector<2x96xf32> to vector<2x32xf32>
    %23 = vector.extract_strided_slice %20 {offsets = [0, 64], sizes = [2, 32], strides = [1, 1]} : vector<2x96xf32> to vector<2x32xf32>
    %24 = vector.extract_strided_slice %14 {offsets = [0, 96], sizes = [2, 32], strides = [1, 1]} : vector<2x128xf32> to vector<2x32xf32>
    %25 = math.tanh %24 : vector<2x32xf32>
    %26 = arith.mulf %22, %10 : vector<2x32xf32>
    %27 = arith.mulf %21, %25 : vector<2x32xf32>
    %28 = arith.addf %26, %27 : vector<2x32xf32>
    %29 = math.tanh %28 : vector<2x32xf32>
    %30 = arith.mulf %23, %29 : vector<2x32xf32>
    %c0_i32 = arith.constant 0 : i32
    %31 = vector.broadcast %c0_i32 : i32 to vector<2x32xi32>
    %32 = arith.cmpi sgt, %7, %31 : vector<2x32xi32>
    %33 = arith.select %32, %30, %9 : vector<2x32xi1>, vector<2x32xf32>
    %34 = arith.select %32, %28, %10 : vector<2x32xi1>, vector<2x32xf32>
    %35 = vector.extract_strided_slice %6 {offsets = [1, 0, 0], sizes = [1, 2, 128], strides = [1, 1, 1]} : vector<8x2x128xf32> to vector<1x2x128xf32>
    %36 = vector.shape_cast %35 : vector<1x2x128xf32> to vector<2x128xf32>
    %cst_13 = arith.constant dense<0.000000e+00> : vector<2x128xf32>
    %37 = tpu.matmul %33, %8, %cst_13 {dimension_numbers = #tpu.dot_dimension_numbers<[1], [0], [0], [1], [0, 0, 1, 1], [], []>} : vector<2x32xf32>, vector<32x128xf32>, vector<2x128xf32> -> vector<2x128xf32>
    %38 = arith.addf %36, %37 : vector<2x128xf32>
    %39 = vector.extract_strided_slice %38 {offsets = [0, 0], sizes = [2, 96], strides = [1, 1]} : vector<2x128xf32> to vector<2x96xf32>
    %40 = arith.negf %39 : vector<2x96xf32>
    %41 = math.exp %40 : vector<2x96xf32>
    %cst_14 = arith.constant 1.000000e+00 : f32
    %42 = vector.broadcast %cst_14 : f32 to vector<2x96xf32>
    %43 = arith.addf %42, %41 : vector<2x96xf32>
    %44 = arith.divf %42, %43 : vector<2x96xf32>
    %45 = vector.extract_strided_slice %44 {offsets = [0, 0], sizes = [2, 32], strides = [1, 1]} : vector<2x96xf32> to vector<2x32xf32>
    %46 = vector.extract_strided_slice %44 {offsets = [0, 32], sizes = [2, 32], strides = [1, 1]} : vector<2x96xf32> to vector<2x32xf32>
    %47 = vector.extract_strided_slice %44 {offsets = [0, 64], sizes = [2, 32], strides = [1, 1]} : vector<2x96xf32> to vector<2x32xf32>
    %48 = vector.extract_strided_slice %38 {offsets = [0, 96], sizes = [2, 32], strides = [1, 1]} : vector<2x128xf32> to vector<2x32xf32>
    %49 = math.tanh %48 : vector<2x32xf32>
    %50 = arith.mulf %46, %34 : vector<2x32xf32>
    %51 = arith.mulf %45, %49 : vector<2x32xf32>
    %52 = arith.addf %50, %51 : vector<2x32xf32>
    %53 = math.tanh %52 : vector<2x32xf32>
    %54 = arith.mulf %47, %53 : vector<2x32xf32>
    %c1_i32 = arith.constant 1 : i32
    %55 = vector.broadcast %c1_i32 : i32 to vector<2x32xi32>
    %56 = arith.cmpi sgt, %7, %55 : vector<2x32xi32>
    %57 = arith.select %56, %54, %33 : vector<2x32xi1>, vector<2x32xf32>
    %58 = arith.select %56, %52, %34 : vector<2x32xi1>, vector<2x32xf32>
    %59 = vector.extract_strided_slice %6 {offsets = [2, 0, 0], sizes = [1, 2, 128], strides = [1, 1, 1]} : vector<8x2x128xf32> to vector<1x2x128xf32>
    %60 = vector.shape_cast %59 : vector<1x2x128xf32> to vector<2x128xf32>
    %cst_15 = arith.constant dense<0.000000e+00> : vector<2x128xf32>
    %61 = tpu.matmul %57, %8, %cst_15 {dimension_numbers = #tpu.dot_dimension_numbers<[1], [0], [0], [1], [0, 0, 1, 1], [], []>} : vector<2x32xf32>, vector<32x128xf32>, vector<2x128xf32> -> vector<2x128xf32>
    %62 = arith.addf %60, %61 : vector<2x128xf32>
    %63 = vector.extract_strided_slice %62 {offsets = [0, 0], sizes = [2, 96], strides = [1, 1]} : vector<2x128xf32> to vector<2x96xf32>
    %64 = arith.negf %63 : vector<2x96xf32>
    %65 = math.exp %64 : vector<2x96xf32>
    %cst_16 = arith.constant 1.000000e+00 : f32
    %66 = vector.broadcast %cst_16 : f32 to vector<2x96xf32>
    %67 = arith.addf %66, %65 : vector<2x96xf32>
    %68 = arith.divf %66, %67 : vector<2x96xf32>
    %69 = vector.extract_strided_slice %68 {offsets = [0, 0], sizes = [2, 32], strides = [1, 1]} : vector<2x96xf32> to vector<2x32xf32>
    %70 = vector.extract_strided_slice %68 {offsets = [0, 32], sizes = [2, 32], strides = [1, 1]} : vector<2x96xf32> to vector<2x32xf32>
    %71 = vector.extract_strided_slice %68 {offsets = [0, 64], sizes = [2, 32], strides = [1, 1]} : vector<2x96xf32> to vector<2x32xf32>
    %72 = vector.extract_strided_slice %62 {offsets = [0, 96], sizes = [2, 32], strides = [1, 1]} : vector<2x128xf32> to vector<2x32xf32>
    %73 = math.tanh %72 : vector<2x32xf32>
    %74 = arith.mulf %70, %58 : vector<2x32xf32>
    %75 = arith.mulf %69, %73 : vector<2x32xf32>
    %76 = arith.addf %74, %75 : vector<2x32xf32>
    %77 = math.tanh %76 : vector<2x32xf32>
    %78 = arith.mulf %71, %77 : vector<2x32xf32>
    %c2_i32 = arith.constant 2 : i32
    %79 = vector.broadcast %c2_i32 : i32 to vector<2x32xi32>
    %80 = arith.cmpi sgt, %7, %79 : vector<2x32xi32>
    %81 = arith.select %80, %78, %57 : vector<2x32xi1>, vector<2x32xf32>
    %82 = arith.select %80, %76, %58 : vector<2x32xi1>, vector<2x32xf32>
    %83 = vector.extract_strided_slice %6 {offsets = [3, 0, 0], sizes = [1, 2, 128], strides = [1, 1, 1]} : vector<8x2x128xf32> to vector<1x2x128xf32>
    %84 = vector.shape_cast %83 : vector<1x2x128xf32> to vector<2x128xf32>
    %cst_17 = arith.constant dense<0.000000e+00> : vector<2x128xf32>
    %85 = tpu.matmul %81, %8, %cst_17 {dimension_numbers = #tpu.dot_dimension_numbers<[1], [0], [0], [1], [0, 0, 1, 1], [], []>} : vector<2x32xf32>, vector<32x128xf32>, vector<2x128xf32> -> vector<2x128xf32>
    %86 = arith.addf %84, %85 : vector<2x128xf32>
    %87 = vector.extract_strided_slice %86 {offsets = [0, 0], sizes = [2, 96], strides = [1, 1]} : vector<2x128xf32> to vector<2x96xf32>
    %88 = arith.negf %87 : vector<2x96xf32>
    %89 = math.exp %88 : vector<2x96xf32>
    %cst_18 = arith.constant 1.000000e+00 : f32
    %90 = vector.broadcast %cst_18 : f32 to vector<2x96xf32>
    %91 = arith.addf %90, %89 : vector<2x96xf32>
    %92 = arith.divf %90, %91 : vector<2x96xf32>
    %93 = vector.extract_strided_slice %92 {offsets = [0, 0], sizes = [2, 32], strides = [1, 1]} : vector<2x96xf32> to vector<2x32xf32>
    %94 = vector.extract_strided_slice %92 {offsets = [0, 32], sizes = [2, 32], strides = [1, 1]} : vector<2x96xf32> to vector<2x32xf32>
    %95 = vector.extract_strided_slice %92 {offsets = [0, 64], sizes = [2, 32], strides = [1, 1]} : vector<2x96xf32> to vector<2x32xf32>
    %96 = vector.extract_strided_slice %86 {offsets = [0, 96], sizes = [2, 32], strides = [1, 1]} : vector<2x128xf32> to vector<2x32xf32>
    %97 = math.tanh %96 : vector<2x32xf32>
    %98 = arith.mulf %94, %82 : vector<2x32xf32>
    %99 = arith.mulf %93, %97 : vector<2x32xf32>
    %100 = arith.addf %98, %99 : vector<2x32xf32>
    %101 = math.tanh %100 : vector<2x32xf32>
    %102 = arith.mulf %95, %101 : vector<2x32xf32>
    %c3_i32 = arith.constant 3 : i32
    %103 = vector.broadcast %c3_i32 : i32 to vector<2x32xi32>
    %104 = arith.cmpi sgt, %7, %103 : vector<2x32xi32>
    %105 = arith.select %104, %102, %81 : vector<2x32xi1>, vector<2x32xf32>
    %106 = arith.select %104, %100, %82 : vector<2x32xi1>, vector<2x32xf32>
    %107 = vector.extract_strided_slice %6 {offsets = [4, 0, 0], sizes = [1, 2, 128], strides = [1, 1, 1]} : vector<8x2x128xf32> to vector<1x2x128xf32>
    %108 = vector.shape_cast %107 : vector<1x2x128xf32> to vector<2x128xf32>
    %cst_19 = arith.constant dense<0.000000e+00> : vector<2x128xf32>
    %109 = tpu.matmul %105, %8, %cst_19 {dimension_numbers = #tpu.dot_dimension_numbers<[1], [0], [0], [1], [0, 0, 1, 1], [], []>} : vector<2x32xf32>, vector<32x128xf32>, vector<2x128xf32> -> vector<2x128xf32>
    %110 = arith.addf %108, %109 : vector<2x128xf32>
    %111 = vector.extract_strided_slice %110 {offsets = [0, 0], sizes = [2, 96], strides = [1, 1]} : vector<2x128xf32> to vector<2x96xf32>
    %112 = arith.negf %111 : vector<2x96xf32>
    %113 = math.exp %112 : vector<2x96xf32>
    %cst_20 = arith.constant 1.000000e+00 : f32
    %114 = vector.broadcast %cst_20 : f32 to vector<2x96xf32>
    %115 = arith.addf %114, %113 : vector<2x96xf32>
    %116 = arith.divf %114, %115 : vector<2x96xf32>
    %117 = vector.extract_strided_slice %116 {offsets = [0, 0], sizes = [2, 32], strides = [1, 1]} : vector<2x96xf32> to vector<2x32xf32>
    %118 = vector.extract_strided_slice %116 {offsets = [0, 32], sizes = [2, 32], strides = [1, 1]} : vector<2x96xf32> to vector<2x32xf32>
    %119 = vector.extract_strided_slice %116 {offsets = [0, 64], sizes = [2, 32], strides = [1, 1]} : vector<2x96xf32> to vector<2x32xf32>
    %120 = vector.extract_strided_slice %110 {offsets = [0, 96], sizes = [2, 32], strides = [1, 1]} : vector<2x128xf32> to vector<2x32xf32>
    %121 = math.tanh %120 : vector<2x32xf32>
    %122 = arith.mulf %118, %106 : vector<2x32xf32>
    %123 = arith.mulf %117, %121 : vector<2x32xf32>
    %124 = arith.addf %122, %123 : vector<2x32xf32>
    %125 = math.tanh %124 : vector<2x32xf32>
    %126 = arith.mulf %119, %125 : vector<2x32xf32>
    %c4_i32 = arith.constant 4 : i32
    %127 = vector.broadcast %c4_i32 : i32 to vector<2x32xi32>
    %128 = arith.cmpi sgt, %7, %127 : vector<2x32xi32>
    %129 = arith.select %128, %126, %105 : vector<2x32xi1>, vector<2x32xf32>
    %130 = arith.select %128, %124, %106 : vector<2x32xi1>, vector<2x32xf32>
    %131 = vector.extract_strided_slice %6 {offsets = [5, 0, 0], sizes = [1, 2, 128], strides = [1, 1, 1]} : vector<8x2x128xf32> to vector<1x2x128xf32>
    %132 = vector.shape_cast %131 : vector<1x2x128xf32> to vector<2x128xf32>
    %cst_21 = arith.constant dense<0.000000e+00> : vector<2x128xf32>
    %133 = tpu.matmul %129, %8, %cst_21 {dimension_numbers = #tpu.dot_dimension_numbers<[1], [0], [0], [1], [0, 0, 1, 1], [], []>} : vector<2x32xf32>, vector<32x128xf32>, vector<2x128xf32> -> vector<2x128xf32>
    %134 = arith.addf %132, %133 : vector<2x128xf32>
    %135 = vector.extract_strided_slice %134 {offsets = [0, 0], sizes = [2, 96], strides = [1, 1]} : vector<2x128xf32> to vector<2x96xf32>
    %136 = arith.negf %135 : vector<2x96xf32>
    %137 = math.exp %136 : vector<2x96xf32>
    %cst_22 = arith.constant 1.000000e+00 : f32
    %138 = vector.broadcast %cst_22 : f32 to vector<2x96xf32>
    %139 = arith.addf %138, %137 : vector<2x96xf32>
    %140 = arith.divf %138, %139 : vector<2x96xf32>
    %141 = vector.extract_strided_slice %140 {offsets = [0, 0], sizes = [2, 32], strides = [1, 1]} : vector<2x96xf32> to vector<2x32xf32>
    %142 = vector.extract_strided_slice %140 {offsets = [0, 32], sizes = [2, 32], strides = [1, 1]} : vector<2x96xf32> to vector<2x32xf32>
    %143 = vector.extract_strided_slice %140 {offsets = [0, 64], sizes = [2, 32], strides = [1, 1]} : vector<2x96xf32> to vector<2x32xf32>
    %144 = vector.extract_strided_slice %134 {offsets = [0, 96], sizes = [2, 32], strides = [1, 1]} : vector<2x128xf32> to vector<2x32xf32>
    %145 = math.tanh %144 : vector<2x32xf32>
    %146 = arith.mulf %142, %130 : vector<2x32xf32>
    %147 = arith.mulf %141, %145 : vector<2x32xf32>
    %148 = arith.addf %146, %147 : vector<2x32xf32>
    %149 = math.tanh %148 : vector<2x32xf32>
    %150 = arith.mulf %143, %149 : vector<2x32xf32>
    %c5_i32 = arith.constant 5 : i32
    %151 = vector.broadcast %c5_i32 : i32 to vector<2x32xi32>
    %152 = arith.cmpi sgt, %7, %151 : vector<2x32xi32>
    %153 = arith.select %152, %150, %129 : vector<2x32xi1>, vector<2x32xf32>
    %154 = arith.select %152, %148, %130 : vector<2x32xi1>, vector<2x32xf32>
    %155 = vector.extract_strided_slice %6 {offsets = [6, 0, 0], sizes = [1, 2, 128], strides = [1, 1, 1]} : vector<8x2x128xf32> to vector<1x2x128xf32>
    %156 = vector.shape_cast %155 : vector<1x2x128xf32> to vector<2x128xf32>
    %cst_23 = arith.constant dense<0.000000e+00> : vector<2x128xf32>
    %157 = tpu.matmul %153, %8, %cst_23 {dimension_numbers = #tpu.dot_dimension_numbers<[1], [0], [0], [1], [0, 0, 1, 1], [], []>} : vector<2x32xf32>, vector<32x128xf32>, vector<2x128xf32> -> vector<2x128xf32>
    %158 = arith.addf %156, %157 : vector<2x128xf32>
    %159 = vector.extract_strided_slice %158 {offsets = [0, 0], sizes = [2, 96], strides = [1, 1]} : vector<2x128xf32> to vector<2x96xf32>
    %160 = arith.negf %159 : vector<2x96xf32>
    %161 = math.exp %160 : vector<2x96xf32>
    %cst_24 = arith.constant 1.000000e+00 : f32
    %162 = vector.broadcast %cst_24 : f32 to vector<2x96xf32>
    %163 = arith.addf %162, %161 : vector<2x96xf32>
    %164 = arith.divf %162, %163 : vector<2x96xf32>
    %165 = vector.extract_strided_slice %164 {offsets = [0, 0], sizes = [2, 32], strides = [1, 1]} : vector<2x96xf32> to vector<2x32xf32>
    %166 = vector.extract_strided_slice %164 {offsets = [0, 32], sizes = [2, 32], strides = [1, 1]} : vector<2x96xf32> to vector<2x32xf32>
    %167 = vector.extract_strided_slice %164 {offsets = [0, 64], sizes = [2, 32], strides = [1, 1]} : vector<2x96xf32> to vector<2x32xf32>
    %168 = vector.extract_strided_slice %158 {offsets = [0, 96], sizes = [2, 32], strides = [1, 1]} : vector<2x128xf32> to vector<2x32xf32>
    %169 = math.tanh %168 : vector<2x32xf32>
    %170 = arith.mulf %166, %154 : vector<2x32xf32>
    %171 = arith.mulf %165, %169 : vector<2x32xf32>
    %172 = arith.addf %170, %171 : vector<2x32xf32>
    %173 = math.tanh %172 : vector<2x32xf32>
    %174 = arith.mulf %167, %173 : vector<2x32xf32>
    %c6_i32 = arith.constant 6 : i32
    %175 = vector.broadcast %c6_i32 : i32 to vector<2x32xi32>
    %176 = arith.cmpi sgt, %7, %175 : vector<2x32xi32>
    %177 = arith.select %176, %174, %153 : vector<2x32xi1>, vector<2x32xf32>
    %178 = arith.select %176, %172, %154 : vector<2x32xi1>, vector<2x32xf32>
    %179 = vector.extract_strided_slice %6 {offsets = [7, 0, 0], sizes = [1, 2, 128], strides = [1, 1, 1]} : vector<8x2x128xf32> to vector<1x2x128xf32>
    %180 = vector.shape_cast %179 : vector<1x2x128xf32> to vector<2x128xf32>
    %cst_25 = arith.constant dense<0.000000e+00> : vector<2x128xf32>
    %181 = tpu.matmul %177, %8, %cst_25 {dimension_numbers = #tpu.dot_dimension_numbers<[1], [0], [0], [1], [0, 0, 1, 1], [], []>} : vector<2x32xf32>, vector<32x128xf32>, vector<2x128xf32> -> vector<2x128xf32>
    %182 = arith.addf %180, %181 : vector<2x128xf32>
    %183 = vector.extract_strided_slice %182 {offsets = [0, 0], sizes = [2, 96], strides = [1, 1]} : vector<2x128xf32> to vector<2x96xf32>
    %184 = arith.negf %183 : vector<2x96xf32>
    %185 = math.exp %184 : vector<2x96xf32>
    %cst_26 = arith.constant 1.000000e+00 : f32
    %186 = vector.broadcast %cst_26 : f32 to vector<2x96xf32>
    %187 = arith.addf %186, %185 : vector<2x96xf32>
    %188 = arith.divf %186, %187 : vector<2x96xf32>
    %189 = vector.extract_strided_slice %188 {offsets = [0, 0], sizes = [2, 32], strides = [1, 1]} : vector<2x96xf32> to vector<2x32xf32>
    %190 = vector.extract_strided_slice %188 {offsets = [0, 32], sizes = [2, 32], strides = [1, 1]} : vector<2x96xf32> to vector<2x32xf32>
    %191 = vector.extract_strided_slice %188 {offsets = [0, 64], sizes = [2, 32], strides = [1, 1]} : vector<2x96xf32> to vector<2x32xf32>
    %192 = vector.extract_strided_slice %182 {offsets = [0, 96], sizes = [2, 32], strides = [1, 1]} : vector<2x128xf32> to vector<2x32xf32>
    %193 = math.tanh %192 : vector<2x32xf32>
    %194 = arith.mulf %190, %178 : vector<2x32xf32>
    %195 = arith.mulf %189, %193 : vector<2x32xf32>
    %196 = arith.addf %194, %195 : vector<2x32xf32>
    %197 = math.tanh %196 : vector<2x32xf32>
    %198 = arith.mulf %191, %197 : vector<2x32xf32>
    %c7_i32 = arith.constant 7 : i32
    %199 = vector.broadcast %c7_i32 : i32 to vector<2x32xi32>
    %200 = arith.cmpi sgt, %7, %199 : vector<2x32xi32>
    %201 = arith.select %200, %198, %177 : vector<2x32xi1>, vector<2x32xf32>
    %c0_27 = arith.constant 0 : index
    %c0_28 = arith.constant 0 : index
    %202 = vector.load %arg2[%c0_27, %c0_28] : memref<2x4xf32, #tpu.memory_space<vmem>>, vector<2x4xf32>
    %cst_29 = arith.constant 5.000000e+01 : f32
    %203 = vector.broadcast %cst_29 : f32 to vector<2x4xf32>
    %204 = arith.subf %202, %203 : vector<2x4xf32>
    %cst_30 = arith.constant 1.000000e+02 : f32
    %205 = vector.broadcast %cst_30 : f32 to vector<2x4xf32>
    %206 = arith.divf %204, %205 : vector<2x4xf32>
    %c0_31 = arith.constant 0 : index
    %c0_32 = arith.constant 0 : index
    %207 = vector.load %arg7[%c0_31, %c0_32] : memref<4x32xf32, #tpu.memory_space<vmem>>, vector<4x32xf32>
    %cst_33 = arith.constant dense<0.000000e+00> : vector<2x32xf32>
    %208 = tpu.matmul %206, %207, %cst_33 {dimension_numbers = #tpu.dot_dimension_numbers<[1], [0], [0], [1], [0, 0, 1, 1], [], []>} : vector<2x4xf32>, vector<4x32xf32>, vector<2x32xf32> -> vector<2x32xf32>
    %c0_34 = arith.constant 0 : index
    %c0_35 = arith.constant 0 : index
    %209 = vector.load %arg8[%c0_34, %c0_35] : memref<1x32xf32, #tpu.memory_space<vmem>>, vector<1x32xf32>
    %210 = vector.broadcast %209 : vector<1x32xf32> to vector<2x32xf32>
    %211 = arith.addf %208, %210 : vector<2x32xf32>
    %cst_36 = arith.constant 0.000000e+00 : f32
    %212 = vector.broadcast %cst_36 : f32 to vector<2x32xf32>
    %213 = arith.maximumf %211, %212 : vector<2x32xf32>
    %c0_37 = arith.constant 0 : index
    %c0_38 = arith.constant 0 : index
    %214 = vector.load %arg9[%c0_37, %c0_38] : memref<32x2xf32, #tpu.memory_space<vmem>>, vector<32x2xf32>
    %cst_39 = arith.constant dense<0.000000e+00> : vector<2x2xf32>
    %215 = tpu.matmul %213, %214, %cst_39 {dimension_numbers = #tpu.dot_dimension_numbers<[1], [0], [0], [1], [0, 0, 1, 1], [], []>} : vector<2x32xf32>, vector<32x2xf32>, vector<2x2xf32> -> vector<2x2xf32>
    %c0_40 = arith.constant 0 : index
    %c0_41 = arith.constant 0 : index
    %216 = vector.load %arg10[%c0_40, %c0_41] : memref<1x2xf32, #tpu.memory_space<vmem>>, vector<1x2xf32>
    %217 = vector.broadcast %216 : vector<1x2xf32> to vector<2x2xf32>
    %218 = arith.addf %215, %217 : vector<2x2xf32>
    %cst_42 = arith.constant 0.000000e+00 : f32
    %219 = vector.broadcast %cst_42 : f32 to vector<2x2xf32>
    %220 = arith.maximumf %218, %219 : vector<2x2xf32>
    %c0_43 = arith.constant 0 : index
    %c0_44 = arith.constant 0 : index
    %221 = vector.load %arg3[%c0_43, %c0_44] : memref<2x1xf32, #tpu.memory_space<vmem>>, vector<2x1xf32>
    %222 = vector.broadcast %221 : vector<2x1xf32> to vector<2x32xf32>
    %223 = arith.mulf %222, %201 : vector<2x32xf32>
    %cst_45 = arith.constant dense<0.000000e+00> : vector<32xf32>
    %224 = vector.multi_reduction <add>, %223, %cst_45 [0] : vector<2x32xf32> to vector<32xf32>
    %225 = vector.shape_cast %224 : vector<32xf32> to vector<1x32xf32>
    %226 = vector.broadcast %221 : vector<2x1xf32> to vector<2x32xf32>
    %227 = arith.mulf %226, %201 : vector<2x32xf32>
    %228 = arith.mulf %227, %201 : vector<2x32xf32>
    %cst_46 = arith.constant dense<0.000000e+00> : vector<32xf32>
    %229 = vector.multi_reduction <add>, %228, %cst_46 [0] : vector<2x32xf32> to vector<32xf32>
    %230 = vector.shape_cast %229 : vector<32xf32> to vector<1x32xf32>
    %231 = arith.mulf %225, %225 : vector<1x32xf32>
    %232 = arith.subf %230, %231 : vector<1x32xf32>
    %233 = vector.broadcast %221 : vector<2x1xf32> to vector<2x2xf32>
    %234 = arith.mulf %233, %220 : vector<2x2xf32>
    %cst_47 = arith.constant dense<0.000000e+00> : vector<2xf32>
    %235 = vector.multi_reduction <add>, %234, %cst_47 [0] : vector<2x2xf32> to vector<2xf32>
    %236 = vector.shape_cast %235 : vector<2xf32> to vector<1x2xf32>
    %237 = vector.broadcast %221 : vector<2x1xf32> to vector<2x2xf32>
    %238 = arith.mulf %237, %220 : vector<2x2xf32>
    %239 = arith.mulf %238, %220 : vector<2x2xf32>
    %cst_48 = arith.constant dense<0.000000e+00> : vector<2xf32>
    %240 = vector.multi_reduction <add>, %239, %cst_48 [0] : vector<2x2xf32> to vector<2xf32>
    %241 = vector.shape_cast %240 : vector<2xf32> to vector<1x2xf32>
    %242 = arith.mulf %236, %236 : vector<1x2xf32>
    %243 = arith.subf %241, %242 : vector<1x2xf32>
    %c0_49 = arith.constant 0 : index
    %c0_50 = arith.constant 0 : index
    %244 = vector.load %arg11[%c0_49, %c0_50] : memref<32x128xf32, #tpu.memory_space<vmem>>, vector<32x128xf32>
    %cst_51 = arith.constant dense<0.000000e+00> : vector<1x128xf32>
    %245 = tpu.matmul %225, %244, %cst_51 {dimension_numbers = #tpu.dot_dimension_numbers<[1], [0], [0], [1], [0, 0, 1, 1], [], []>} : vector<1x32xf32>, vector<32x128xf32>, vector<1x128xf32> -> vector<1x128xf32>
    %c0_52 = arith.constant 0 : index
    %c0_53 = arith.constant 0 : index
    %246 = vector.load %arg12[%c0_52, %c0_53] : memref<32x128xf32, #tpu.memory_space<vmem>>, vector<32x128xf32>
    %cst_54 = arith.constant dense<0.000000e+00> : vector<1x128xf32>
    %247 = tpu.matmul %232, %246, %cst_54 {dimension_numbers = #tpu.dot_dimension_numbers<[1], [0], [0], [1], [0, 0, 1, 1], [], []>} : vector<1x32xf32>, vector<32x128xf32>, vector<1x128xf32> -> vector<1x128xf32>
    %248 = arith.addf %245, %247 : vector<1x128xf32>
    %c0_55 = arith.constant 0 : index
    %c0_56 = arith.constant 0 : index
    %249 = vector.load %arg14[%c0_55, %c0_56] : memref<2x128xf32, #tpu.memory_space<vmem>>, vector<2x128xf32>
    %cst_57 = arith.constant dense<0.000000e+00> : vector<1x128xf32>
    %250 = tpu.matmul %236, %249, %cst_57 {dimension_numbers = #tpu.dot_dimension_numbers<[1], [0], [0], [1], [0, 0, 1, 1], [], []>} : vector<1x2xf32>, vector<2x128xf32>, vector<1x128xf32> -> vector<1x128xf32>
    %251 = arith.addf %248, %250 : vector<1x128xf32>
    %c0_58 = arith.constant 0 : index
    %c0_59 = arith.constant 0 : index
    %252 = vector.load %arg15[%c0_58, %c0_59] : memref<2x128xf32, #tpu.memory_space<vmem>>, vector<2x128xf32>
    %cst_60 = arith.constant dense<0.000000e+00> : vector<1x128xf32>
    %253 = tpu.matmul %243, %252, %cst_60 {dimension_numbers = #tpu.dot_dimension_numbers<[1], [0], [0], [1], [0, 0, 1, 1], [], []>} : vector<1x2xf32>, vector<2x128xf32>, vector<1x128xf32> -> vector<1x128xf32>
    %254 = arith.addf %251, %253 : vector<1x128xf32>
    %c0_61 = arith.constant 0 : index
    %c0_62 = arith.constant 0 : index
    %255 = vector.load %arg13[%c0_61, %c0_62] : memref<32x128xf32, #tpu.memory_space<vmem>>, vector<32x128xf32>
    %cst_63 = arith.constant dense<0.000000e+00> : vector<2x128xf32>
    %256 = tpu.matmul %201, %255, %cst_63 {dimension_numbers = #tpu.dot_dimension_numbers<[1], [0], [0], [1], [0, 0, 1, 1], [], []>} : vector<2x32xf32>, vector<32x128xf32>, vector<2x128xf32> -> vector<2x128xf32>
    %c0_64 = arith.constant 0 : index
    %c0_65 = arith.constant 0 : index
    %257 = vector.load %arg16[%c0_64, %c0_65] : memref<2x128xf32, #tpu.memory_space<vmem>>, vector<2x128xf32>
    %cst_66 = arith.constant dense<0.000000e+00> : vector<2x128xf32>
    %258 = tpu.matmul %220, %257, %cst_66 {dimension_numbers = #tpu.dot_dimension_numbers<[1], [0], [0], [1], [0, 0, 1, 1], [], []>} : vector<2x2xf32>, vector<2x128xf32>, vector<2x128xf32> -> vector<2x128xf32>
    %259 = arith.addf %256, %258 : vector<2x128xf32>
    %260 = vector.broadcast %254 : vector<1x128xf32> to vector<2x128xf32>
    %261 = arith.addf %259, %260 : vector<2x128xf32>
    %c0_67 = arith.constant 0 : index
    %c0_68 = arith.constant 0 : index
    %262 = vector.load %arg17[%c0_67, %c0_68] : memref<1x128xf32, #tpu.memory_space<vmem>>, vector<1x128xf32>
    %263 = vector.broadcast %262 : vector<1x128xf32> to vector<2x128xf32>
    %264 = arith.addf %261, %263 : vector<2x128xf32>
    %cst_69 = arith.constant 0.000000e+00 : f32
    %265 = vector.broadcast %cst_69 : f32 to vector<2x128xf32>
    %266 = arith.maximumf %264, %265 : vector<2x128xf32>
    %c0_70 = arith.constant 0 : index
    %c0_71 = arith.constant 0 : index
    %267 = vector.load %arg18[%c0_70, %c0_71] : memref<128x3xf32, #tpu.memory_space<vmem>>, vector<128x3xf32>
    %cst_72 = arith.constant dense<0.000000e+00> : vector<2x3xf32>
    %268 = tpu.matmul %266, %267, %cst_72 {dimension_numbers = #tpu.dot_dimension_numbers<[1], [0], [0], [1], [0, 0, 1, 1], [], []>} : vector<2x128xf32>, vector<128x3xf32>, vector<2x3xf32> -> vector<2x3xf32>
    %c0_73 = arith.constant 0 : index
    %c0_74 = arith.constant 0 : index
    %269 = vector.load %arg19[%c0_73, %c0_74] : memref<1x3xf32, #tpu.memory_space<vmem>>, vector<1x3xf32>
    %270 = vector.broadcast %269 : vector<1x3xf32> to vector<2x3xf32>
    %271 = arith.addf %268, %270 : vector<2x3xf32>
    %c0_75 = arith.constant 0 : index
    %c0_76 = arith.constant 0 : index
    %272 = vector.load %arg20[%c0_75, %c0_76] : memref<2x3xf32, #tpu.memory_space<vmem>>, vector<2x3xf32>
    tpu.vector_store %arg20[%c0_75, %c0_76], %271 {strides = array<i32>} : memref<2x3xf32, #tpu.memory_space<vmem>>, vector<2x3xf32>,
    return
  }
}

</mosaic_0001>

<bundles_post_ra>
// kernel: tpu_custom_call.1
= control target key start
LH: loop header
LB: loop body
LE: loop exit
PB: predicated region body
PF: predicated region fallthrough
CT: control target
= control target key end

     0   :  { %s3027_s0 = inlined_call_operand.vmem [shape: f32[16,4], index: 0, kind: input, shape index: {}]   ;;  %s3028_s1 = inlined_call_operand.vmem [shape: s32[2,32], index: 1, kind: input, shape index: {}]   ;;  %s3029_s2 = inlined_call_operand.vmem [shape: f32[2,4], index: 2, kind: input, shape index: {}]   ;;  %s3030_s3 = inlined_call_operand.vmem [shape: f32[2,1], index: 3, kind: input, shape index: {}]   ;;  %s3031_s4 = inlined_call_operand.vmem [shape: f32[4,128], index: 4, kind: input, shape index: {}]   ;;  %s3032_s5 = inlined_call_operand.vmem [shape: f32[32,128], index: 5, kind: input, shape index: {}]   ;;  %s3033_s6 = inlined_call_operand.vmem [shape: f32[1,128], index: 6, kind: input, shape index: {}]   ;;  %s3034_s7 = inlined_call_operand.vmem [shape: f32[4,32], index: 7, kind: input, shape index: {}]   ;;  %s3035_s8 = inlined_call_operand.vmem [shape: f32[1,32], index: 8, kind: input, shape index: {}]   ;;  %s3036_s9 = inlined_call_operand.vmem [shape: f32[32,2], index: 9, kind: input, shape index: {}]   ;;  %s3037_s10 = inlined_call_operand.vmem [shape: f32[1,2], index: 10, kind: input, shape index: {}]   ;;  %s3038_s11 = inlined_call_operand.vmem [shape: f32[32,128], index: 11, kind: input, shape index: {}]   ;;  %s3039_s12 = inlined_call_operand.vmem [shape: f32[32,128], index: 12, kind: input, shape index: {}]   ;;  %s3040_s13 = inlined_call_operand.vmem [shape: f32[32,128], index: 13, kind: input, shape index: {}]   ;;  %s3041_s14 = inlined_call_operand.vmem [shape: f32[2,128], index: 14, kind: input, shape index: {}]   ;;  %s3042_s15 = inlined_call_operand.vmem [shape: f32[2,128], index: 15, kind: input, shape index: {}]   ;;  %s3043_s16 = inlined_call_operand.vmem [shape: f32[2,128], index: 16, kind: input, shape index: {}]   ;;  %s3044_s17 = inlined_call_operand.vmem [shape: f32[1,128], index: 17, kind: input, shape index: {}]   ;;  %s3045_s18 = inlined_call_operand.vmem [shape: f32[128,3], index: 18, kind: input, shape index: {}]   ;;  %s3046_s19 = inlined_call_operand.vmem [shape: f32[1,3], index: 19, kind: input, shape index: {}]   ;;  %s3047_s20 = inlined_call_operand.hbm [shape: f32[2,3], index: 20, kind: output, shape index: {}]  }
   0x1   :  { %3049 = sst [smem:[#allocation5_spill]] %s3027_s0 }
   0x2   :  { %3050 = sst [smem:[#allocation6_spill]] %s3028_s1 }
   0x3   :  { %3051 = sst [smem:[#allocation7_spill]] %s3029_s2 }
   0x4   :  { %3052 = sst [smem:[#allocation8_spill]] %s3030_s3 }
   0x5   :  { %3053 = sst [smem:[#allocation9_spill]] %s3031_s4 }
   0x6   :  { %s3054_s23 = sld [smem:[#allocation9_spill]]  ;;  %vm83_vm0 = vcmask 1043456   ;;  %vm76_vm1 = vcmask 31744   ;;  %v2480_v2 = vmov 0.0   ;;  %v2604_v3 = vld [vmem:[%s3032_s5 + $0x18] sm:$0xff]  ;;  %v2614_v5 = vld [vmem:[%s3032_s5 + $0x10] sm:$0xff] }
   0x7   :  { %s3055_s25 = sld [smem:[#allocation5_spill]]  ;;  %2197 = vmatprep.subr.mxu1 %v2480_v2 }
   0xc   :  { %v68_v0 = vld [vmem:[%s3054_s23] sm:$0xf] }
   0xd   :  { %v66_v1 = vld [vmem:[%s3055_s25] sm:$0xff]  ;;  %2192 = vmatprep.subr.msk.mxu0 %vm83_vm0, %v68_v0  ;;  %v67_v4 = vld [vmem:[%s3055_s25 + $0x8] sm:$0xff] }
   0xe   :  { %2193 = vmatpush3.msk.msra.mxu0 %vm83_vm0, %v68_v0  ;;  %2194 = vmatprep.mubr.msk.f32.mxu0 %vm76_vm1, %v66_v1 }
   0xf   :  { %25 = vsyncpa [#allocation3], 0  ;;  %2198 = vmatpush3.msra.mxu1 %v2604_v3  ;;  %2195 = vmatmul.mubr.msk.f32.vlgmr.msra.gmra.mxu0 %vm76_vm1, %v67_v4  ;;  %v2622_v6 = vld [vmem:[%s3032_s5 + $0x8] sm:$0xff]  ;;  %vm2481_vm2 = vmmov 0   ;;  %v2632_v7 = vld [vmem:[%s3032_s5] sm:$0xff]  ;;  %v168_v10 = vlaneseq  ;;  %s2484_s23 = smov 96  }
  0x10   :  { %2199 = vmatprep.subr.mxu1 %v2480_v2  ;;  %2205 = vmatprep.mubr.msk.f32.mxu1 %vm2481_vm2, %v2480_v2  ;;  %v2482_v8 = vmov 1983009808   ;;  %v2068_v11 = vld [vmem:[%s3033_s6] ss:$0 sm:$0xff]  ;;  %s2483_s6 = smov 32   ;;  %s3056_s25 = sld [smem:[#allocation6_spill]] }
  0x11   :  { %2200 = vmatpush3.msra.mxu1 %v2614_v5  ;;  %2230 = vmatprep.subr.mxu0 %v2480_v2  ;;  %v166_v9 = vunpack.c.l.s4 %v2482_v8  ;;  %v2662_v13 = vshrl.u32 %v168_v10, 7  ;;  %s2485_s3 = smov 64   ;;  %vm211_vm4 = vcmask 261120   ;;  %s3057_s29 = sld [smem:[#allocation7_spill]]  ;;  %vm1461_vm11 = vcmask 9216  }
  0x12   :  { %2201 = vmatprep.subr.mxu1 %v2480_v2  ;;  %2231 = vmatpush3.msra.mxu0 %v2604_v3  ;;  %s3058_s24 = sld [smem:[#allocation8_spill]]  ;;  %vm1442_vm13 = vcmask 254976   ;;  %vm1638_vm14 = vcmask 1041408   ;;  %vm1634_vm15 = vcmask 15360  }
  0x13   :  { %2202 = vmatpush3.msra.mxu1 %v2622_v6  ;;  %2232 = vmatprep.subr.mxu0 %v2480_v2  ;;  %v167_v12 = vunpack.c.0.s8 %v166_v9 }
  0x14   :  { %2203 = vmatprep.subr.mxu1 %v2480_v2  ;;  %2233 = vmatpush3.msra.mxu0 %v2614_v5 }
  0x15   :  { %2204 = vmatpush3.msra.mxu1 %v2632_v7  ;;  %2234 = vmatprep.subr.mxu0 %v2480_v2  ;;  %v2669_v18 = vsub.s32 %v167_v12, %v2662_v13 }
  0x16   :  { %2206 = vmatmul.mubr.f32.vlgmr.msra.gmra.mxu1 %v2480_v2  ;;  %2208 = vmatprep.subr.mxu1 %v2480_v2  ;;  %v2681_v35 = vld [vmem:[%s3056_s25] sm:$0x3] }
  0x17   :  { %2209 = vmatpush3.msra.mxu1 %v2604_v3  ;;  %2216 = vmatprep.mubr.msk.f32.mxu1 %vm2481_vm2, %v2480_v2  ;;  %vm310_vm3 = vcmp.gt.s32.totalorder %v2681_v35, 0  ;;  %vm444_vm5 = vcmp.gt.s32.totalorder %v2681_v35, 1  ;;  %vm578_vm6 = vcmp.gt.s32.totalorder %v2681_v35, 2  ;;  %vm712_vm7 = vcmp.gt.s32.totalorder %v2681_v35, 3 }
  0x18   :  { %2210 = vmatprep.subr.mxu1 %v2480_v2  ;;  %2235 = vmatpush3.msra.mxu0 %v2622_v6  ;;  %vm846_vm8 = vcmp.gt.s32.totalorder %v2681_v35, 4  ;;  %vm980_vm9 = vcmp.gt.s32.totalorder %v2681_v35, 5  ;;  %vm1114_vm10 = vcmp.gt.s32.totalorder %v2681_v35, 6  ;;  %vm1248_vm12 = vcmp.gt.s32.totalorder %v2681_v35, 7 }
  0x19   :  { %2211 = vmatpush3.msra.mxu1 %v2614_v5  ;;  %2236 = vmatprep.subr.mxu0 %v2480_v2 }
  0x1a   :  { %2212 = vmatprep.subr.mxu1 %v2480_v2  ;;  %2237 = vmatpush3.msra.mxu0 %v2632_v7 }
  0x1b   :  { %2213 = vmatpush3.msra.mxu1 %v2622_v6  ;;  %2238 = vmatprep.mubr.msk.f32.mxu0 %vm2481_vm2, %v2480_v2 }
  0x1c   :  { %2214 = vmatprep.subr.mxu1 %v2480_v2  ;;  %2252 = vmatprep.subr.mxu0 %v2480_v2 }
  0x1d   :  { %2215 = vmatpush3.msra.mxu1 %v2632_v7 }
  0x1e   :  { %2219 = vmatprep.subr.mxu1 %v2480_v2 }
  0xcf   :  { %v2196_v14 = vpop.f32.mrf.mxu0 }
  0xd0   :  { %v2664_v15 = vadd.f32 %v2196_v14, %v2068_v11 }
  0xd1   :  { %v153_v16 = vpop.f32.mrf.mxu0 }
  0xd2   :  { %v2666_v17 = vadd.f32 %v2068_v11, %v153_v16 }
  0xd4   :  { %v171_v19 = vrot.slane %v2666_v17, %v2669_v18  ;;  %v164_v10 = vcombine.high %v2666_v17, %v2666_v17 }
  0xd6   :  { %v281_v20 = vpop.f32.mrf.mxu1  ;;  %v179_v44 = vcombine.high %v171_v19, %v171_v19  ;;  %v178_v11 = vrot.slane %v164_v10, %v2669_v18 }
  0xd7   :  { %v285_v21 = vadd.f32 %v281_v20, %v171_v19 }
  0xd8   :  { %v2207_v22 = vpop.f32.mrf.mxu1 }
  0xd9   :  { %2394 = vtanh.f32 %v285_v21  ;;  %v2072_v24 = vmul.f32 -1.442695, %v285_v21 }
  0xdb   :  { %2396 = vpow2.f32 %v2072_v24 }
  0xe6   :  { %v2395_v23 = vpop.eup %2394 }
  0xe7   :  { %295 = vrot.lane.b32.xlu0 %v2395_v23, %s2483_s6 }
  0xe8   :  { %v2397_v25 = vpop.eup %2396 }
  0xe9   :  { %v289_v26 = vadd.f32 1.0, %v2397_v25 }
  0xeb   :  { %2398 = vrcp.f32 %v289_v26 }
  0xf8   :  { %v2399_v27 = vpop.eup %2398 }
  0xf9   :  { %v293_v30 = vmul.f32 0.0, %v2399_v27 }
 0x159   :  { %v296_v28 = vpop.permute.xlu0 %295 }
 0x15a   :  { %v298_v29 = vmul.f32 %v2399_v27, %v296_v28 }
 0x15c   :  { %300 = vrot.lane.b32.xlu0 %v298_v29, %s2483_s6 }
 0x1ce   :  { %v301_v31 = vpop.permute.xlu0 %300 }
 0x1cf   :  { %v303_v32 = vadd.f32 %v301_v31, %v293_v30 }
 0x1d1   :  { %2400 = vtanh.f32 %v303_v32  ;;  %v330_v33 = vrot.slane %v303_v32, %v2669_v18 }
 0x1d3   :  { %331 = vrot.lane.b32.xlu0 %v330_v33, %s2484_s23 }
 0x1de   :  { %v2401_v34 = vpop.eup %2400 }
 0x1df   :  { %306 = vrot.lane.b32.xlu1 %v2401_v34, %s2483_s6 }
 0x245   :  { %v332_v36 = vpop.permute.xlu0 %331 }
 0x246   :  { %v334_v37 = vsel %vm310_vm3, %v332_v36, 0.0 }
 0x247   :  { %v423_v38 = vrot.slane %v334_v37, %v2669_v18 }
 0x249   :  { %424 = vrot.lane.b32.xlu0 %v423_v38, %s2483_s6 }
 0x251   :  { %v307_v39 = vpop.permute.xlu1 %306 }
 0x252   :  { %v309_v40 = vmul.f32 %v2399_v27, %v307_v39 }
 0x254   :  { %v318_v41 = vrot.slane %v309_v40, %v2669_v18  ;;  %v180_v40 = vcombine.high %v178_v11, %v178_v11 }
 0x256   :  { %319 = vrot.lane.b32.xlu1 %v318_v41, %s2485_s3 }
 0x2bb   :  { %v425_v55 = vpop.permute.xlu0 %424 }
 0x2c8   :  { %v320_v42 = vpop.permute.xlu1 %319 }
 0x2c9   :  { %v322_v43 = vsel %vm310_vm3, %v320_v42, 0.0 }
 0x2ca   :  { %2217 = vmatmul.mubr.msk.f32.vlgmr.msra.gmra.mxu1 %vm211_vm4, %v322_v43 }
 0x2cb   :  { %2220 = vmatpush3.msra.mxu1 %v2604_v3  ;;  %2227 = vmatprep.mubr.msk.f32.mxu1 %vm2481_vm2, %v2480_v2 }
 0x2cc   :  { %2221 = vmatprep.subr.mxu1 %v2480_v2 }
 0x2cd   :  { %2222 = vmatpush3.msra.mxu1 %v2614_v5 }
 0x2ce   :  { %2223 = vmatprep.subr.mxu1 %v2480_v2 }
 0x2cf   :  { %2224 = vmatpush3.msra.mxu1 %v2622_v6 }
 0x2d0   :  { %2225 = vmatprep.subr.mxu1 %v2480_v2 }
 0x2d1   :  { %2226 = vmatpush3.msra.mxu1 %v2632_v7 }
 0x2d2   :  { %2241 = vmatprep.subr.mxu1 %v2480_v2 }
 0x38a   :  { %v404_v45 = vpop.f32.mrf.mxu1 }
 0x38b   :  { %v408_v46 = vadd.f32 %v404_v45, %v179_v44 }
 0x38c   :  { %v2218_v47 = vpop.f32.mrf.mxu1 }
 0x38d   :  { %2402 = vtanh.f32 %v408_v46  ;;  %v2074_v49 = vmul.f32 -1.442695, %v408_v46 }
 0x38f   :  { %2404 = vpow2.f32 %v2074_v49 }
 0x39a   :  { %v2403_v48 = vpop.eup %2402 }
 0x39b   :  { %429 = vrot.lane.b32.xlu1 %v2403_v48, %s2483_s6 }
 0x39c   :  { %v2405_v50 = vpop.eup %2404 }
 0x39d   :  { %v412_v51 = vadd.f32 1.0, %v2405_v50 }
 0x39f   :  { %2406 = vrcp.f32 %v412_v51 }
 0x3ac   :  { %v2407_v52 = vpop.eup %2406 }
 0x3ad   :  { %v427_v56 = vmul.f32 %v2407_v52, %v425_v55 }
 0x40d   :  { %v430_v53 = vpop.permute.xlu1 %429 }
 0x40e   :  { %v432_v54 = vmul.f32 %v2407_v52, %v430_v53 }
 0x410   :  { %434 = vrot.lane.b32.xlu1 %v432_v54, %s2483_s6 }
 0x482   :  { %v435_v57 = vpop.permute.xlu1 %434 }
 0x483   :  { %v437_v58 = vadd.f32 %v435_v57, %v427_v56 }
 0x485   :  { %2408 = vtanh.f32 %v437_v58  ;;  %v464_v60 = vrot.slane %v437_v58, %v2669_v18 }
 0x492   :  { %v2409_v59 = vpop.eup %2408 }
 0x493   :  { %440 = vrot.lane.b32.xlu0 %v2409_v59, %s2483_s6 }
 0x497   :  { %465 = vrot.lane.b32.xlu0 %v464_v60, %s2484_s23 }
 0x505   :  { %v441_v61 = vpop.permute.xlu0 %440 }
 0x506   :  { %v443_v62 = vmul.f32 %v2407_v52, %v441_v61 }
 0x508   :  { %v452_v63 = vrot.slane %v443_v62, %v2669_v18 }
 0x509   :  { %v466_v0 = vpop.permute.xlu0 %465 }
 0x50a   :  { %v468_v1 = vsel %vm444_vm5, %v466_v0, %v334_v37  ;;  %453 = vrot.lane.b32.xlu1 %v452_v63, %s2485_s3 }
 0x50b   :  { %v557_v4 = vrot.slane %v468_v1, %v2669_v18 }
 0x50d   :  { %558 = vrot.lane.b32.xlu0 %v557_v4, %s2483_s6 }
 0x57c   :  { %v454_v8 = vpop.permute.xlu1 %453 }
 0x57d   :  { %v456_v9 = vsel %vm444_vm5, %v454_v8, %v322_v43 }
 0x57e   :  { %2228 = vmatmul.mubr.msk.f32.vlgmr.msra.gmra.mxu1 %vm211_vm4, %v456_v9 }
 0x57f   :  { %2242 = vmatpush3.msra.mxu1 %v2604_v3  ;;  %2249 = vmatprep.mubr.msk.f32.mxu1 %vm2481_vm2, %v2480_v2  ;;  %v559_v17 = vpop.permute.xlu0 %558 }
 0x580   :  { %2243 = vmatprep.subr.mxu1 %v2480_v2 }
 0x581   :  { %2244 = vmatpush3.msra.mxu1 %v2614_v5 }
 0x582   :  { %2245 = vmatprep.subr.mxu1 %v2480_v2 }
 0x583   :  { %2246 = vmatpush3.msra.mxu1 %v2622_v6 }
 0x584   :  { %2247 = vmatprep.subr.mxu1 %v2480_v2 }
 0x585   :  { %2248 = vmatpush3.msra.mxu1 %v2632_v7 }
 0x586   :  { %2263 = vmatprep.subr.mxu1 %v2480_v2 }
 0x63e   :  { %v538_v12 = vpop.f32.mrf.mxu1 }
 0x63f   :  { %v542_v14 = vadd.f32 %v538_v12, %v178_v11 }
 0x640   :  { %v2229_v16 = vpop.f32.mrf.mxu1 }
 0x641   :  { %2410 = vtanh.f32 %v542_v14  ;;  %v2076_v20 = vmul.f32 -1.442695, %v542_v14 }
 0x643   :  { %2412 = vpow2.f32 %v2076_v20 }
 0x64e   :  { %v2411_v19 = vpop.eup %2410 }
 0x64f   :  { %563 = vrot.lane.b32.xlu1 %v2411_v19, %s2483_s6 }
 0x650   :  { %v2413_v21 = vpop.eup %2412 }
 0x651   :  { %v546_v22 = vadd.f32 1.0, %v2413_v21 }
 0x653   :  { %2414 = vrcp.f32 %v546_v22 }
 0x660   :  { %v2415_v23 = vpop.eup %2414 }
 0x661   :  { %v561_v26 = vmul.f32 %v2415_v23, %v559_v17 }
 0x6c1   :  { %v564_v24 = vpop.permute.xlu1 %563 }
 0x6c2   :  { %v566_v25 = vmul.f32 %v2415_v23, %v564_v24 }
 0x6c4   :  { %568 = vrot.lane.b32.xlu1 %v566_v25, %s2483_s6 }
 0x736   :  { %v569_v27 = vpop.permute.xlu1 %568 }
 0x737   :  { %v571_v28 = vadd.f32 %v569_v27, %v561_v26 }
 0x739   :  { %2416 = vtanh.f32 %v571_v28  ;;  %v598_v30 = vrot.slane %v571_v28, %v2669_v18 }
 0x746   :  { %v2417_v29 = vpop.eup %2416 }
 0x747   :  { %574 = vrot.lane.b32.xlu0 %v2417_v29, %s2483_s6 }
 0x74b   :  { %599 = vrot.lane.b32.xlu0 %v598_v30, %s2484_s23 }
 0x7b9   :  { %v575_v31 = vpop.permute.xlu0 %574 }
 0x7ba   :  { %v577_v32 = vmul.f32 %v2415_v23, %v575_v31 }
 0x7bc   :  { %v586_v33 = vrot.slane %v577_v32, %v2669_v18 }
 0x7bd   :  { %v600_v34 = vpop.permute.xlu0 %599 }
 0x7be   :  { %v602_v36 = vsel %vm578_vm6, %v600_v34, %v468_v1  ;;  %587 = vrot.lane.b32.xlu1 %v586_v33, %s2485_s3  ;;  %v188_v1 = vrot.slane %v2664_v15, %v2669_v18 }
 0x7bf   :  { %v691_v37 = vrot.slane %v602_v36, %v2669_v18 }
 0x7c0   :  { %v196_v34 = vcombine.high %v188_v1, %v188_v1 }
 0x7c1   :  { %692 = vrot.lane.b32.xlu0 %v691_v37, %s2483_s6 }
 0x830   :  { %v588_v38 = vpop.permute.xlu1 %587 }
 0x831   :  { %v590_v39 = vsel %vm578_vm6, %v588_v38, %v456_v9 }
 0x832   :  { %2239 = vmatmul.mubr.msk.f32.vlgmr.msra.gmra.mxu0 %vm211_vm4, %v590_v39 }
 0x833   :  { %2253 = vmatpush3.msra.mxu0 %v2604_v3  ;;  %2260 = vmatprep.mubr.msk.f32.mxu0 %vm2481_vm2, %v2480_v2  ;;  %v693_v51 = vpop.permute.xlu0 %692 }
 0x834   :  { %2254 = vmatprep.subr.mxu0 %v2480_v2 }
 0x835   :  { %2255 = vmatpush3.msra.mxu0 %v2614_v5 }
 0x836   :  { %2256 = vmatprep.subr.mxu0 %v2480_v2 }
 0x837   :  { %2257 = vmatpush3.msra.mxu0 %v2622_v6 }
 0x838   :  { %2258 = vmatprep.subr.mxu0 %v2480_v2 }
 0x839   :  { %2259 = vmatpush3.msra.mxu0 %v2632_v7 }
 0x83a   :  { %2274 = vmatprep.subr.mxu0 %v2480_v2 }
 0x8f2   :  { %v672_v41 = vpop.f32.mrf.mxu0 }
 0x8f3   :  { %v676_v42 = vadd.f32 %v672_v41, %v180_v40 }
 0x8f4   :  { %v2240_v43 = vpop.f32.mrf.mxu0 }
 0x8f5   :  { %2418 = vtanh.f32 %v676_v42  ;;  %v2078_v45 = vmul.f32 -1.442695, %v676_v42 }
 0x8f7   :  { %2420 = vpow2.f32 %v2078_v45 }
 0x902   :  { %v2419_v44 = vpop.eup %2418 }
 0x903   :  { %697 = vrot.lane.b32.xlu1 %v2419_v44, %s2483_s6 }
 0x904   :  { %v2421_v46 = vpop.eup %2420 }
 0x905   :  { %v680_v47 = vadd.f32 1.0, %v2421_v46 }
 0x907   :  { %2422 = vrcp.f32 %v680_v47 }
 0x914   :  { %v2423_v48 = vpop.eup %2422 }
 0x915   :  { %v695_v52 = vmul.f32 %v2423_v48, %v693_v51 }
 0x975   :  { %v698_v49 = vpop.permute.xlu1 %697 }
 0x976   :  { %v700_v50 = vmul.f32 %v2423_v48, %v698_v49 }
 0x978   :  { %702 = vrot.lane.b32.xlu1 %v700_v50, %s2483_s6 }
 0x9ea   :  { %v703_v53 = vpop.permute.xlu1 %702 }
 0x9eb   :  { %v705_v54 = vadd.f32 %v703_v53, %v695_v52 }
 0x9ed   :  { %2424 = vtanh.f32 %v705_v54  ;;  %v732_v56 = vrot.slane %v705_v54, %v2669_v18 }
 0x9fa   :  { %v2425_v55 = vpop.eup %2424 }
 0x9fb   :  { %708 = vrot.lane.b32.xlu0 %v2425_v55, %s2483_s6 }
 0x9ff   :  { %733 = vrot.lane.b32.xlu0 %v732_v56, %s2484_s23  ;;  %v181_v56 = vcombine.high %v2664_v15, %v2664_v15 }
 0xa6d   :  { %v709_v57 = vpop.permute.xlu0 %708 }
 0xa6e   :  { %v711_v58 = vmul.f32 %v2423_v48, %v709_v57  ;;  %v195_v57 = vrot.slane %v181_v56, %v2669_v18  ;;  %v1482_v56 = vld [vmem:[%s3038_s11 + $0x18] sm:$0xff] }
 0xa70   :  { %v720_v59 = vrot.slane %v711_v58, %v2669_v18 }
 0xa71   :  { %v734_v60 = vpop.permute.xlu0 %733 }
 0xa72   :  { %v736_v61 = vsel %vm712_vm7, %v734_v60, %v602_v36  ;;  %721 = vrot.lane.b32.xlu1 %v720_v59, %s2485_s3 }
 0xa73   :  { %v825_v62 = vrot.slane %v736_v61, %v2669_v18 }
 0xa75   :  { %826 = vrot.lane.b32.xlu0 %v825_v62, %s2483_s6 }
 0xae4   :  { %v722_v63 = vpop.permute.xlu1 %721 }
 0xae5   :  { %v724_v0 = vsel %vm712_vm7, %v722_v63, %v590_v39 }
 0xae6   :  { %2250 = vmatmul.mubr.msk.f32.vlgmr.msra.gmra.mxu1 %vm211_vm4, %v724_v0 }
 0xae7   :  { %2264 = vmatpush3.msra.mxu1 %v2604_v3  ;;  %2271 = vmatprep.mubr.msk.f32.mxu1 %vm2481_vm2, %v2480_v2  ;;  %v827_v21 = vpop.permute.xlu0 %826 }
 0xae8   :  { %2265 = vmatprep.subr.mxu1 %v2480_v2 }
 0xae9   :  { %2266 = vmatpush3.msra.mxu1 %v2614_v5 }
 0xaea   :  { %2267 = vmatprep.subr.mxu1 %v2480_v2 }
 0xaeb   :  { %2268 = vmatpush3.msra.mxu1 %v2622_v6 }
 0xaec   :  { %2269 = vmatprep.subr.mxu1 %v2480_v2 }
 0xaed   :  { %2270 = vmatpush3.msra.mxu1 %v2632_v7 }
 0xaee   :  { %2285 = vmatprep.subr.mxu1 %v2480_v2 }
 0xba6   :  { %v806_v4 = vpop.f32.mrf.mxu1 }
 0xba7   :  { %v810_v8 = vadd.f32 %v806_v4, %v188_v1 }
 0xba8   :  { %v2251_v9 = vpop.f32.mrf.mxu1 }
 0xba9   :  { %2426 = vtanh.f32 %v810_v8  ;;  %v2080_v11 = vmul.f32 -1.442695, %v810_v8 }
 0xbab   :  { %2428 = vpow2.f32 %v2080_v11 }
 0xbb6   :  { %v2427_v10 = vpop.eup %2426 }
 0xbb7   :  { %831 = vrot.lane.b32.xlu1 %v2427_v10, %s2483_s6 }
 0xbb8   :  { %v2429_v12 = vpop.eup %2428 }
 0xbb9   :  { %v814_v14 = vadd.f32 1.0, %v2429_v12 }
 0xbbb   :  { %2430 = vrcp.f32 %v814_v14 }
 0xbc8   :  { %v2431_v16 = vpop.eup %2430 }
 0xbc9   :  { %v829_v22 = vmul.f32 %v2431_v16, %v827_v21 }
 0xc29   :  { %v832_v19 = vpop.permute.xlu1 %831 }
 0xc2a   :  { %v834_v20 = vmul.f32 %v2431_v16, %v832_v19 }
 0xc2c   :  { %836 = vrot.lane.b32.xlu1 %v834_v20, %s2483_s6 }
 0xc9e   :  { %v837_v23 = vpop.permute.xlu1 %836 }
 0xc9f   :  { %v839_v24 = vadd.f32 %v837_v23, %v829_v22 }
 0xca1   :  { %2432 = vtanh.f32 %v839_v24  ;;  %v866_v17 = vrot.slane %v839_v24, %v2669_v18 }
 0xcae   :  { %v2433_v25 = vpop.eup %2432 }
 0xcaf   :  { %842 = vrot.lane.b32.xlu0 %v2433_v25, %s2483_s6 }
 0xcb3   :  { %867 = vrot.lane.b32.xlu0 %v866_v17, %s2484_s23  ;;  %v1265_v17 = vld [vmem:[%s3034_s7] sm:$0xf] }
 0xd21   :  { %v843_v26 = vpop.permute.xlu0 %842 }
 0xd22   :  { %v845_v27 = vmul.f32 %v2431_v16, %v843_v26  ;;  %v1261_v26 = vld [vmem:[%s3057_s29] sm:$0x3] }
 0xd24   :  { %v854_v28 = vrot.slane %v845_v27, %v2669_v18  ;;  %v2087_v27 = vadd.f32 -50.0, %v1261_v26 }
 0xd25   :  { %v868_v29 = vpop.permute.xlu0 %867 }
 0xd26   :  { %v870_v30 = vsel %vm846_vm8, %v868_v29, %v736_v61  ;;  %855 = vrot.lane.b32.xlu1 %v854_v28, %s2485_s3  ;;  %v1264_v28 = vmul.f32 0.01, %v2087_v27  ;;  %v197_v29 = vcombine.high %v195_v57, %v195_v57 }
 0xd27   :  { %v959_v31 = vrot.slane %v870_v30, %v2669_v18 }
 0xd29   :  { %960 = vrot.lane.b32.xlu0 %v959_v31, %s2483_s6 }
 0xd98   :  { %v856_v32 = vpop.permute.xlu1 %855 }
 0xd99   :  { %v858_v33 = vsel %vm846_vm8, %v856_v32, %v724_v0 }
 0xd9a   :  { %2261 = vmatmul.mubr.msk.f32.vlgmr.msra.gmra.mxu0 %vm211_vm4, %v858_v33 }
 0xd9b   :  { %2275 = vmatpush3.msra.mxu0 %v2604_v3  ;;  %2282 = vmatprep.mubr.msk.f32.mxu0 %vm2481_vm2, %v2480_v2 }
 0xd9c   :  { %2276 = vmatprep.subr.mxu0 %v2480_v2 }
 0xd9d   :  { %2277 = vmatpush3.msra.mxu0 %v2614_v5 }
 0xd9e   :  { %2278 = vmatprep.subr.mxu0 %v2480_v2 }
 0xd9f   :  { %2279 = vmatpush3.msra.mxu0 %v2622_v6 }
 0xda0   :  { %2280 = vmatprep.subr.mxu0 %v2480_v2 }
 0xda1   :  { %2281 = vmatpush3.msra.mxu0 %v2632_v7  ;;  %v961_v7 = vpop.permute.xlu0 %960 }
 0xda2   :  { %2290 = vmatprep.subr.mxu0 %v2480_v2 }
 0xe5a   :  { %v940_v36 = vpop.f32.mrf.mxu0 }
 0xe5b   :  { %v944_v3 = vadd.f32 %v940_v36, %v196_v34 }
 0xe5c   :  { %v2262_v37 = vpop.f32.mrf.mxu0 }
 0xe5d   :  { %2434 = vtanh.f32 %v944_v3  ;;  %v2082_v39 = vmul.f32 -1.442695, %v944_v3 }
 0xe5f   :  { %2436 = vpow2.f32 %v2082_v39 }
 0xe6a   :  { %v2435_v38 = vpop.eup %2434 }
 0xe6b   :  { %965 = vrot.lane.b32.xlu1 %v2435_v38, %s2483_s6 }
 0xe6c   :  { %v2437_v5 = vpop.eup %2436 }
 0xe6d   :  { %v948_v40 = vadd.f32 1.0, %v2437_v5  ;;  %v1353_v5 = vld [vmem:[%s3036_s9 + $0x18] sm:$0xff] }
 0xe6f   :  { %2438 = vrcp.f32 %v948_v40  ;;  %v2088_v40 = vld [vmem:[%s3035_s8] ss:$0 sm:$0xff] }
 0xe7c   :  { %v2439_v6 = vpop.eup %2438 }
 0xe7d   :  { %v963_v43 = vmul.f32 %v2439_v6, %v961_v7  ;;  %v2486_v7 = vmov 0  }
 0xe7e   :  { %2392 = vset.pattern.permute.xlu1 %v2486_v7  ;;  %2393 = vset.pattern.permute.xlu0 %v2486_v7 }
 0xedd   :  { %v966_v41 = vpop.permute.xlu1 %965 }
 0xede   :  { %v968_v42 = vmul.f32 %v2439_v6, %v966_v41  ;;  %v1352_v41 = vld [vmem:[%s3036_s9 + $0x10] sm:$0xff] }
 0xee0   :  { %970 = vrot.lane.b32.xlu1 %v968_v42, %s2483_s6 }
 0xf52   :  { %v971_v44 = vpop.permute.xlu1 %970 }
 0xf53   :  { %v973_v45 = vadd.f32 %v971_v44, %v963_v43  ;;  %v1435_v43 = vld [vmem:[%s3058_s24] sm:$0x3]  ;;  %v1351_v44 = vld [vmem:[%s3036_s9 + $0x8] sm:$0xff] }
 0xf55   :  { %2440 = vtanh.f32 %v973_v45  ;;  %v1000_v47 = vrot.slane %v973_v45, %v2669_v18 }
 0xf62   :  { %v2441_v46 = vpop.eup %2440 }
 0xf63   :  { %976 = vrot.lane.b32.xlu0 %v2441_v46, %s2483_s6 }
 0xf67   :  { %1001 = vrot.lane.b32.xlu0 %v1000_v47, %s2484_s23  ;;  %v1350_v47 = vld [vmem:[%s3036_s9] sm:$0xff] }
 0xfd5   :  { %v977_v48 = vpop.permute.xlu0 %976 }
 0xfd6   :  { %v979_v49 = vmul.f32 %v2439_v6, %v977_v48 }
 0xfd8   :  { %v988_v50 = vrot.slane %v979_v49, %v2669_v18 }
 0xfd9   :  { %v1002_v51 = vpop.permute.xlu0 %1001 }
 0xfda   :  { %v1004_v52 = vsel %vm980_vm9, %v1002_v51, %v870_v30  ;;  %989 = vrot.lane.b32.xlu1 %v988_v50, %s2485_s3 }
 0xfdb   :  { %v1093_v53 = vrot.slane %v1004_v52, %v2669_v18 }
 0xfdd   :  { %1094 = vrot.lane.b32.xlu0 %v1093_v53, %s2483_s6 }
0x104c   :  { %v990_v54 = vpop.permute.xlu1 %989 }
0x104d   :  { %v992_v55 = vsel %vm980_vm9, %v990_v54, %v858_v33 }
0x104e   :  { %2272 = vmatmul.mubr.msk.f32.vlgmr.msra.gmra.mxu1 %vm211_vm4, %v992_v55 }
0x104f   :  { %2287 = vmatprep.mubr.msk.f32.mxu1 %vm2481_vm2, %v2480_v2  ;;  %v1095_v15 = vpop.permute.xlu0 %1094  ;;  %2286 = vmatpush3.msk.msra.mxu1 %vm83_vm0, %v1265_v17  ;;  %vm2052_vm0 = vcmask 17408  }
0x1050   :  { %2301 = vmatprep.subr.mxu1 %v2480_v2 }
0x1052   :  { %2288 = vmatmul.mubr.msk.f32.vlgmr.msra.gmra.mxu1 %vm76_vm1, %v1264_v28 }
0x1053   :  { %2309 = vmatprep.mubr.msk.f32.mxu1 %vm2481_vm2, %v2480_v2 }
0x110e   :  { %v1074_v58 = vpop.f32.mrf.mxu1 }
0x110f   :  { %v1078_v59 = vadd.f32 %v1074_v58, %v195_v57  ;;  %v1481_v58 = vld [vmem:[%s3038_s11 + $0x10] sm:$0xff] }
0x1110   :  { %v2273_v60 = vpop.f32.mrf.mxu1 }
0x1111   :  { %2442 = vtanh.f32 %v1078_v59  ;;  %v2084_v62 = vmul.f32 -1.442695, %v1078_v59  ;;  %v1486_v60 = vld [vmem:[%s3039_s12 + $0x18] sm:$0xff] }
0x1112   :  { %v1345_v6 = vpop.f32.mrf.mxu1  ;;  %2302 = vmatpush3.msra.mxu1 %v1486_v60  ;;  %v1967_v60 = vld [vmem:[%s3045_s18 + $0x40] sm:$0xff] }
0x1113   :  { %2444 = vpow2.f32 %v2084_v62  ;;  %v1346_v42 = vadd.f32 %v2088_v40, %v1345_v6  ;;  %2303 = vmatprep.subr.mxu1 %v2480_v2  ;;  %v1479_v62 = vld [vmem:[%s3038_s11] sm:$0xff] }
0x1114   :  { %v2289_v45 = vpop.f32.mrf.mxu1 }
0x1115   :  { %v1349_v46 = vmax.f32 %v1346_v42, 0.0 }
0x111e   :  { %v2443_v61 = vpop.eup %2442 }
0x111f   :  { %1099 = vrot.lane.b32.xlu1 %v2443_v61, %s2483_s6  ;;  %v1480_v61 = vld [vmem:[%s3038_s11 + $0x8] sm:$0xff] }
0x1120   :  { %v2445_v63 = vpop.eup %2444 }
0x1121   :  { %v1082_v0 = vadd.f32 1.0, %v2445_v63  ;;  %v1484_v63 = vld [vmem:[%s3039_s12 + $0x8] sm:$0xff] }
0x1123   :  { %2446 = vrcp.f32 %v1082_v0  ;;  %v1483_v0 = vld [vmem:[%s3039_s12] sm:$0xff] }
0x1130   :  { %v2447_v1 = vpop.eup %2446 }
0x1131   :  { %v1097_v9 = vmul.f32 %v2447_v1, %v1095_v15 }
0x1191   :  { %v1100_v4 = vpop.permute.xlu1 %1099 }
0x1192   :  { %v1102_v8 = vmul.f32 %v2447_v1, %v1100_v4 }
0x1194   :  { %1104 = vrot.lane.b32.xlu1 %v1102_v8, %s2483_s6 }
0x1206   :  { %v1105_v10 = vpop.permute.xlu1 %1104 }
0x1207   :  { %v1107_v11 = vadd.f32 %v1105_v10, %v1097_v9 }
0x1209   :  { %2448 = vtanh.f32 %v1107_v11  ;;  %v1134_v14 = vrot.slane %v1107_v11, %v2669_v18 }
0x1216   :  { %v2449_v12 = vpop.eup %2448 }
0x1217   :  { %1110 = vrot.lane.b32.xlu0 %v2449_v12, %s2483_s6 }
0x121b   :  { %1135 = vrot.lane.b32.xlu0 %v1134_v14, %s2484_s23 }
0x1289   :  { %v1111_v16 = vpop.permute.xlu0 %1110 }
0x128a   :  { %v1113_v19 = vmul.f32 %v2447_v1, %v1111_v16  ;;  %v2091_v1 = vld [vmem:[%s3037_s10] ss:$0 sm:$0xff] }
0x128c   :  { %v1122_v20 = vrot.slane %v1113_v19, %v2669_v18 }
0x128d   :  { %v1136_v21 = vpop.permute.xlu0 %1135 }
0x128e   :  { %v1138_v22 = vsel %vm1114_vm10, %v1136_v21, %v1004_v52  ;;  %1123 = vrot.lane.b32.xlu1 %v1122_v20, %s2485_s3 }
0x128f   :  { %v1227_v23 = vrot.slane %v1138_v22, %v2669_v18 }
0x1291   :  { %1228 = vrot.lane.b32.xlu0 %v1227_v23, %s2483_s6 }
0x1300   :  { %v1124_v24 = vpop.permute.xlu1 %1123 }
0x1301   :  { %v2814_v25 = vsel %vm1114_vm10, %v1124_v24, %v992_v55 }
0x1302   :  { %2283 = vmatmul.mubr.msk.f32.vlgmr.msra.gmra.mxu0 %vm211_vm4, %v2814_v25 }
0x1303   :  { %2298 = vmatprep.mubr.msk.f32.mxu0 %vm2481_vm2, %v2480_v2  ;;  %2291 = vmatpush3.msra.mxu0 %v1353_v5  ;;  %v1229_v48 = vpop.permute.xlu0 %1228 }
0x1304   :  { %2292 = vmatprep.subr.mxu0 %v2480_v2 }
0x1305   :  { %2293 = vmatpush3.msra.mxu0 %v1352_v41 }
0x1306   :  { %2294 = vmatprep.subr.mxu0 %v2480_v2 }
0x1307   :  { %2295 = vmatpush3.msra.mxu0 %v1351_v44 }
0x1308   :  { %2296 = vmatprep.subr.mxu0 %v2480_v2 }
0x1309   :  { %2297 = vmatpush3.msra.mxu0 %v1350_v47 }
0x130a   :  { %2299 = vmatmul.mubr.msk.f32.vlgmr.msra.gmra.mxu0 %vm211_vm4, %v1349_v46  ;;  %2312 = vmatprep.subr.mxu0 %v2480_v2  ;;  %v1713_v46 = vld [vmem:[%s3042_s15] sm:$0x3] }
0x130b   :  { %2320 = vmatprep.mubr.msk.f32.mxu0 %vm2481_vm2, %v2480_v2  ;;  %2313 = vmatpush3.msra.mxu0 %v1482_v56  ;;  %v1971_v56 = vld [vmem:[%s3045_s18 + $0x60] sm:$0xff] }
0x130c   :  { %2314 = vmatprep.subr.mxu0 %v2480_v2 }
0x130d   :  { %2315 = vmatpush3.msra.mxu0 %v1481_v58  ;;  %v1969_v58 = vld [vmem:[%s3045_s18 + $0x50] sm:$0xff] }
0x130e   :  { %2316 = vmatprep.subr.mxu0 %v2480_v2 }
0x130f   :  { %2317 = vmatpush3.msra.mxu0 %v1480_v61  ;;  %v1966_v61 = vld [vmem:[%s3045_s18 + $0x38] sm:$0xff] }
0x1310   :  { %2318 = vmatprep.subr.mxu0 %v2480_v2 }
0x1311   :  { %2319 = vmatpush3.msra.mxu0 %v1479_v62  ;;  %v1964_v62 = vld [vmem:[%s3045_s18 + $0x28] sm:$0xff] }
0x1312   :  { %2349 = vmatprep.subr.mxu0 %v2480_v2 }
0x13c2   :  { %v1208_v30 = vpop.f32.mrf.mxu0 }
0x13c3   :  { %v1212_v31 = vadd.f32 %v1208_v30, %v197_v29 }
0x13c4   :  { %v2284_v32 = vpop.f32.mrf.mxu0 }
0x13c5   :  { %2450 = vtanh.f32 %v1212_v31  ;;  %v2086_v34 = vmul.f32 -1.442695, %v1212_v31 }
0x13c7   :  { %2452 = vpow2.f32 %v2086_v34 }
0x13ca   :  { %v1430_v53 = vpop.f32.mrf.mxu0 }
0x13cb   :  { %v1431_v4 = vadd.f32 %v2091_v1, %v1430_v53  ;;  %v1974_v53 = vld [vmem:[%s3045_s18 + $0x78] sm:$0xff]  ;;  %v1961_v1 = vld [vmem:[%s3045_s18 + $0x10] sm:$0xff] }
0x13cc   :  { %v2300_v54 = vpop.f32.mrf.mxu0 }
0x13cd   :  { %v2896_v8 = vmax.f32 %v1431_v4, 0.0  ;;  %v1973_v54 = vld [vmem:[%s3045_s18 + $0x70] sm:$0xff]  ;;  %v1960_v4 = vld [vmem:[%s3045_s18 + $0x8] sm:$0xff] }
0x13d2   :  { %v2451_v33 = vpop.eup %2450 }
0x13d3   :  { %1233 = vrot.lane.b32.xlu1 %v2451_v33, %s2483_s6 }
0x13d4   :  { %v2453_v36 = vpop.eup %2452 }
0x13d5   :  { %v1216_v3 = vadd.f32 1.0, %v2453_v36 }
0x13d7   :  { %2454 = vrcp.f32 %v1216_v3 }
0x13e4   :  { %v2455_v37 = vpop.eup %2454 }
0x13e5   :  { %v1231_v49 = vmul.f32 %v2455_v37, %v1229_v48  ;;  %v1795_v48 = vld [vmem:[%s3043_s16] sm:$0x3] }
0x1445   :  { %v1234_v38 = vpop.permute.xlu1 %1233 }
0x1446   :  { %v1236_v39 = vmul.f32 %v2455_v37, %v1234_v38 }
0x1448   :  { %1238 = vrot.lane.b32.xlu1 %v1236_v39, %s2483_s6 }
0x144c   :  { %1438 = vperm.xlu1 %2392, %v1435_v43   ;;  %v1633_v43 = vld [vmem:[%s3041_s14] sm:$0x3] }
0x14ba   :  { %v1239_v50 = vpop.permute.xlu1 %1238 }
0x14bb   :  { %v1241_v51 = vadd.f32 %v1239_v50, %v1231_v49  ;;  %v1794_v49 = vld [vmem:[%s3040_s13 + $0x18] sm:$0xff]  ;;  %v1793_v50 = vld [vmem:[%s3040_s13 + $0x10] sm:$0xff] }
0x14bd   :  { %2456 = vtanh.f32 %v1241_v51  ;;  %v1792_v51 = vld [vmem:[%s3040_s13 + $0x8] sm:$0xff] }
0x14c7   :  { %v1439_v15 = vpop.permute.xlu1 %1438 }
0x14c8   :  { %v1460_v9 = vmul.f32 %v1439_v15, %v2896_v8 }
0x14ca   :  { %v2457_v52 = vpop.eup %2456  ;;  %v1462_v10 = vsel %vm1461_vm11, %v1460_v9, 0.0  ;;  %v1469_v11 = vmul.f32 %v1460_v9, %v2896_v8 }
0x14cb   :  { %1244 = vrot.lane.b32.xlu0 %v2457_v52, %s2483_s6  ;;  %v1463_v12 = vrot.slane %v1462_v10, 4  ;;  %v1791_v52 = vld [vmem:[%s3040_s13] sm:$0xff] }
0x14cc   :  { %v1470_v14 = vsel %vm1461_vm11, %v1469_v11, 0.0 }
0x14cd   :  { %v1464_v21 = vadd.f32 %v1463_v12, %v1462_v10  ;;  %v1471_v22 = vrot.slane %v1470_v14, 4 }
0x14cf   :  { %v1465_v27 = vrot.slane %v1464_v21, 2  ;;  %v1472_v28 = vadd.f32 %v1471_v22, %v1470_v14 }
0x14d1   :  { %v1466_v32 = vadd.f32 %v1465_v27, %v1464_v21  ;;  %v1473_v33 = vrot.slane %v1472_v28, 2 }
0x14d3   :  { %v1474_v38 = vadd.f32 %v1473_v33, %v1472_v28  ;;  %v2102_v28 = vld [vmem:[%s3044_s17] ss:$0 sm:$0xff] }
0x14d5   :  { %v1475_v42 = vrot.slane %v1474_v38, 1 }
0x14d7   :  { %v1476_v44 = vadd.f32 %v1475_v42, %v1474_v38 }
0x153d   :  { %v1245_v55 = vpop.permute.xlu0 %1244 }
0x153e   :  { %v1247_v57 = vmul.f32 %v2455_v37, %v1245_v55  ;;  %v1467_v37 = vrot.slane %v1466_v32, 1  ;;  %v1972_v55 = vld [vmem:[%s3045_s18 + $0x68] sm:$0xff] }
0x1540   :  { %v1256_v59 = vrot.slane %v1247_v57, %v2669_v18  ;;  %v1485_v18 = vld [vmem:[%s3039_s12 + $0x10] sm:$0xff]  ;;  %v1468_v41 = vadd.f32 %v1467_v37, %v1466_v32  ;;  %v1970_v57 = vld [vmem:[%s3045_s18 + $0x58] sm:$0xff]  ;;  %v2103_v32 = vld [vmem:[%s3046_s19] ss:$0 sm:$0xff] }
0x1541   :  { %2304 = vmatpush3.msra.mxu1 %v1485_v18  ;;  %v1965_v18 = vld [vmem:[%s3045_s18 + $0x30] sm:$0xff] }
0x1542   :  { %1257 = vrot.lane.b32.xlu0 %v1256_v59, %s2485_s3  ;;  %2305 = vmatprep.subr.mxu1 %v2480_v2  ;;  %v1477_v45 = vmul.f32 %v1468_v41, %v1468_v41  ;;  %v1968_v59 = vld [vmem:[%s3045_s18 + $0x48] sm:$0xff]  ;;  %s2487_s3 = smov [#allocation2]  }
0x1543   :  { %2306 = vmatpush3.msra.mxu1 %v1484_v63  ;;  %v1963_v63 = vld [vmem:[%s3045_s18 + $0x20] sm:$0xff]  ;;  %s2060_s23 = sshll.u32 %s2487_s3, 4  ;;  %s2061_s23 = int_to_ptr.vmem [resolvable:$true] %s2060_s23 }
0x1544   :  { %2307 = vmatprep.subr.mxu1 %v2480_v2  ;;  %v1478_v47 = vsub.f32 %v1476_v44, %v1477_v45  ;;  %s2458_s24 = scalar_lea.vmem %s2061_s23, 32  ;;  %p2463_p1 = scmp.lt.s32.totalorder %s2061_s23, %s2061_s23 }
0x1545   :  { %2308 = vmatpush3.msra.mxu1 %v1483_v0  ;;  %v1962_v0 = vld [vmem:[%s3045_s18 + $0x18] sm:$0xff]  ;;  %p2459_p0 = scmp.ne.s32.totalorder %s2061_s23, %s2458_s24  ;;  %p2464_p2 = scmp.lt.s32.totalorder %s2458_s24, %s2458_s24 }
0x1546   :  { %2323 = vmatprep.subr.mxu1 %v2480_v2 }
0x1547   :  { %p2465_p3 = por %p2464_p2, %p2463_p1 }
0x1549   :  { %p2466_p4 = pnand %p2465_p3, %p2459_p0 }
0x15b4   :  { %v1258_v16 = vpop.permute.xlu0 %1257 }
0x15b5   :  { %v2902_v19 = vsel %vm1248_vm12, %v1258_v16, %v2814_v25 }
0x15b6   :  { %v1441_v20 = vmul.f32 %v1439_v15, %v2902_v19 }
0x15b8   :  { %v1443_v23 = vsel %vm1442_vm13, %v1441_v20, 0.0  ;;  %v1450_v24 = vmul.f32 %v1441_v20, %v2902_v19 }
0x15b9   :  { %v1444_v17 = vrot.slane %v1443_v23, 4 }
0x15ba   :  { %v1451_v26 = vsel %vm1442_vm13, %v1450_v24, 0.0 }
0x15bb   :  { %v1445_v29 = vadd.f32 %v1444_v17, %v1443_v23  ;;  %v1452_v35 = vrot.slane %v1451_v26, 4 }
0x15bd   :  { %v1446_v30 = vrot.slane %v1445_v29, 2  ;;  %v1453_v31 = vadd.f32 %v1452_v35, %v1451_v26 }
0x15bf   :  { %v1447_v34 = vadd.f32 %v1446_v30, %v1445_v29  ;;  %v1454_v25 = vrot.slane %v1453_v31, 2 }
0x15c1   :  { %v1448_v36 = vrot.slane %v1447_v34, 1  ;;  %v1455_v3 = vadd.f32 %v1454_v25, %v1453_v31 }
0x15c3   :  { %v1449_v39 = vadd.f32 %v1448_v36, %v1447_v34  ;;  %v1456_v5 = vrot.slane %v1455_v3, 1 }
0x15c5   :  { %v1457_v40 = vadd.f32 %v1456_v5, %v1455_v3  ;;  %v1458_v6 = vmul.f32 %v1449_v39, %v1449_v39  ;;  %2321 = vmatmul.mubr.msk.f32.vlgmr.msra.gmra.mxu0 %vm211_vm4, %v1449_v39 }
0x15c6   :  { %2381 = vmatprep.mubr.msk.f32.mxu0 %vm2481_vm2, %v2480_v2  ;;  %2350 = vmatpush3.msra.mxu0 %v1974_v53 }
0x15c7   :  { %v1459_v7 = vsub.f32 %v1457_v40, %v1458_v6  ;;  %2351 = vmatprep.subr.mxu0 %v2480_v2 }
0x15c8   :  { %2352 = vmatpush3.msra.mxu0 %v1973_v54 }
0x15c9   :  { %2310 = vmatmul.mubr.msk.f32.vlgmr.msra.gmra.mxu1 %vm211_vm4, %v1459_v7  ;;  %2353 = vmatprep.subr.mxu0 %v2480_v2 }
0x15ca   :  { %2324 = vmatpush3.msk.msra.mxu1 %vm1638_vm14, %v1633_v43  ;;  %2325 = vmatprep.mubr.msk.f32.mxu1 %vm2481_vm2, %v2480_v2 }
0x15cb   :  { %2328 = vmatprep.subr.mxu1 %v2480_v2  ;;  %2354 = vmatpush3.msra.mxu0 %v1972_v55 }
0x15cc   :  { %2355 = vmatprep.subr.mxu0 %v2480_v2 }
0x15cd   :  { %2326 = vmatmul.mubr.msk.f32.vlgmr.msra.gmra.mxu1 %vm1634_vm15, %v1468_v41  ;;  %2356 = vmatpush3.msra.mxu0 %v1971_v56 }
0x15ce   :  { %2329 = vmatpush3.msk.msra.mxu1 %vm1638_vm14, %v1713_v46  ;;  %2330 = vmatprep.mubr.msk.f32.mxu1 %vm2481_vm2, %v2480_v2 }
0x15cf   :  { %2333 = vmatprep.subr.mxu1 %v2480_v2  ;;  %2357 = vmatprep.subr.mxu0 %v2480_v2 }
0x15d0   :  { %2358 = vmatpush3.msra.mxu0 %v1970_v57 }
0x15d1   :  { %2331 = vmatmul.mubr.msk.f32.vlgmr.msra.gmra.mxu1 %vm1634_vm15, %v1478_v47  ;;  %2359 = vmatprep.subr.mxu0 %v2480_v2 }
0x15d2   :  { %2334 = vmatpush3.msk.msra.mxu1 %vm1638_vm14, %v1795_v48  ;;  %2335 = vmatprep.mubr.msk.f32.mxu1 %vm2481_vm2, %v2480_v2 }
0x15d3   :  { %2338 = vmatprep.subr.mxu1 %v2480_v2  ;;  %2360 = vmatpush3.msra.mxu0 %v1969_v58 }
0x15d4   :  { %2361 = vmatprep.subr.mxu0 %v2480_v2 }
0x15d5   :  { %2336 = vmatmul.mubr.msk.f32.vlgmr.msra.gmra.mxu1 %vm1634_vm15, %v2896_v8  ;;  %2362 = vmatpush3.msra.mxu0 %v1968_v59  ;;  %v1959_v8 = vld [vmem:[%s3045_s18] sm:$0xff] }
0x15d6   :  { %2339 = vmatpush3.msra.mxu1 %v1794_v49  ;;  %2346 = vmatprep.mubr.msk.f32.mxu1 %vm2481_vm2, %v2480_v2 }
0x15d7   :  { %2340 = vmatprep.subr.mxu1 %v2480_v2  ;;  %2363 = vmatprep.subr.mxu0 %v2480_v2 }
0x15d8   :  { %2341 = vmatpush3.msra.mxu1 %v1793_v50  ;;  %2364 = vmatpush3.msra.mxu0 %v1967_v60 }
0x15d9   :  { %2342 = vmatprep.subr.mxu1 %v2480_v2  ;;  %2365 = vmatprep.subr.mxu0 %v2480_v2 }
0x15da   :  { %2343 = vmatpush3.msra.mxu1 %v1792_v51  ;;  %2366 = vmatpush3.msra.mxu0 %v1966_v61 }
0x15db   :  { %2344 = vmatprep.subr.mxu1 %v2480_v2  ;;  %2367 = vmatprep.subr.mxu0 %v2480_v2 }
0x15dc   :  { %2345 = vmatpush3.msra.mxu1 %v1791_v52  ;;  %2368 = vmatpush3.msra.mxu0 %v1965_v18 }
0x15dd   :  { %2347 = vmatmul.mubr.msk.f32.vlgmr.msra.gmra.mxu1 %vm211_vm4, %v2902_v19  ;;  %2369 = vmatprep.subr.mxu0 %v2480_v2 }
0x15de   :  { %2370 = vmatpush3.msra.mxu0 %v1964_v62 }
0x15df   :  { %2371 = vmatprep.subr.mxu0 %v2480_v2 }
0x15e0   :  { %2372 = vmatpush3.msra.mxu0 %v1963_v63 }
0x15e1   :  { %2373 = vmatprep.subr.mxu0 %v2480_v2 }
0x15e2   :  { %2374 = vmatpush3.msra.mxu0 %v1962_v0 }
0x15e3   :  { %2375 = vmatprep.subr.mxu0 %v2480_v2 }
0x15e4   :  { %2376 = vmatpush3.msra.mxu0 %v1961_v1 }
0x15e5   :  { %2377 = vmatprep.subr.mxu0 %v2480_v2 }
0x15e6   :  { %2378 = vmatpush3.msra.mxu0 %v1960_v4 }
0x15e7   :  { %2379 = vmatprep.subr.mxu0 %v2480_v2  ;;  %v1947_v2 = vsub.s32 0, %v2662_v13 }
0x15e8   :  { %2380 = vmatpush3.msra.mxu0 %v1959_v8 }
0x1685   :  { %v1629_v15 = vpop.f32.mrf.mxu0 }
0x1687   :  { %v2322_v9 = vpop.f32.mrf.mxu0 }
0x1689   :  { %v1556_v10 = vpop.f32.mrf.mxu1 }
0x168a   :  { %v1630_v21 = vadd.f32 %v1629_v15, %v1556_v10 }
0x168b   :  { %v2311_v11 = vpop.f32.mrf.mxu1 }
0x168d   :  { %v1708_v12 = vpop.f32.mrf.mxu1 }
0x168e   :  { %v1712_v23 = vadd.f32 %v1708_v12, %v1630_v21 }
0x168f   :  { %v2327_v14 = vpop.f32.mrf.mxu1 }
0x1691   :  { %v1786_v16 = vpop.f32.mrf.mxu1 }
0x1692   :  { %v1790_v24 = vadd.f32 %v1786_v16, %v1712_v23 }
0x1693   :  { %v2332_v19 = vpop.f32.mrf.mxu1 }
0x1694   :  { %v1948_v26 = vrot.slane %v1790_v24, %v1947_v2 }
0x1695   :  { %v1868_v20 = vpop.f32.mrf.mxu1 }
0x1697   :  { %v2337_v22 = vpop.f32.mrf.mxu1 }
0x169d   :  { %v1941_v17 = vpop.f32.mrf.mxu1 }
0x169e   :  { %v1942_v27 = vadd.f32 %v1941_v17, %v1868_v20 }
0x169f   :  { %v2348_v29 = vpop.f32.mrf.mxu1 }
0x16a0   :  { %v1949_v35 = vadd.f32 %v1948_v26, %v1942_v27 }
0x16a2   :  { %v1957_v30 = vadd.f32 %v2102_v28, %v1949_v35 }
0x16a4   :  { %v1958_v31 = vmax.f32 %v1957_v30, 0.0 }
0x16a6   :  { %2382 = vmatmul.mubr.f32.vlgmr.msra.gmra.mxu0 %v1958_v31 }
0x1766   :  { %v2048_v33 = vpop.f32.mrf.mxu0 }
0x1767   :  { %v2049_v13 = vadd.f32 %v2103_v32, %v2048_v33 }
0x1768   :  { %v2383_v34 = vpop.f32.mrf.mxu0 }
0x1769   :  { %2053 = vst.msk [vmem:[#allocation2] sm:$0x3] %vm2052_vm0, %v2049_v13 }
0x176a   :  { %2469 = shalt.err (!%p2466_p4)
}
0x176b   :  { %2063 = dma.vmem_to_hbm [thread:$0]  %s2061_s23, 32, %s3047_s20, [#allocation3]  }
0x176c   :  { %2478 = dma.done.wait [#allocation3], 32  }
0x176d   :  { %2479 = vsyncadd [#allocation3], 4294967264 }
0x176e   :  { %2067 = vsyncpa [#allocation3], 1 }

</bundles_post_ra>
